<compile_context>
chip_gen: v7x
topology: tpu7x:2x2x1
jax: 0.10.0
libtpu: 0.0.40
codegen_flags: <defaults>
</compile_context>

<pallas_src>
import functools

import jax
import jax.numpy as jnp
from jax import lax
from jax.experimental import pallas as pl
from jax.experimental.pallas import tpu as pltpu


def _squash(x, axis):
    # squash(v) = |v|^2/(1+|v|^2) * v/|v| == v * sqrt(|v|^2) * 1/(1+|v|^2)
    # rsqrt + approx reciprocal both lower to the EUP slot, keeping the VPU divide free.
    sn = jnp.sum(x * x, axis=axis, keepdims=True)
    # TODO(synk): torch squash has no epsilon; zero-norm rows (padded batch lanes) give
    # NaN there too — they stay confined to padded lanes and are sliced off afterwards.
    return x * (sn * lax.rsqrt(sn) * pl.reciprocal(1.0 + sn, approx=True))


def _routing_kernel(*refs, num_iterations, o_tile, data_out, num_in, has_mask, keep_prob):
    if has_mask:
        w_ref, x_ref, seed_ref, o_ref, priors_ref = refs
    else:
        w_ref, x_ref, o_ref, priors_ref = refs
        seed_ref = None

    o_idx = pl.program_id(0)
    tb = x_ref.shape[-1]
    n_in, ot, d_out = num_in, o_tile, data_out

    # Resident whole-weight (single VMEM copy); leading-dim slice selects this o-tile.
    w = w_ref[o_idx]              # (I, OT*Do, Di) bf16
    x = x_ref[...]                # (I, Di, TB)    bf16

    # priors[i, o*Do+d, b] = sum_e w[i, o*Do+d, e] * x[i, e, b]
    # One batched MXU matmul (batch dim = input capsule), bf16 operands, f32 accumulation.
    pr = lax.dot_general(
        w, x,
        dimension_numbers=(((2,), (1,)), ((0,), (0,))),
        preferred_element_type=jnp.float32,
    )                                                   # (I, OT*Do, TB) f32
    # Free layout cast: Do is a multiple of 8 (asserted in the wrapper).
    pr = pr.reshape(n_in, ot, d_out, tb)                # (I, OT, Do, TB)
    pr = _squash(pr, axis=2)                            # squash over data_out

    if has_mask:
        # In-kernel dropout keep-mask: no f32 (I,O,Do,B) mask stream from HBM.
        # TODO(synk): plain keep-mask, no 1/(1-p) rescale (mirrors the original module).
        pltpu.prng_seed(seed_ref[0], pl.program_id(0), pl.program_id(1))
        bits = pltpu.prng_random_bits((n_in, ot, d_out, tb))
        u = (bits & 0x7FFFFF).astype(jnp.float32) * (1.0 / (1 << 23))  # uniform [0,1)
        pr = jnp.where(u < keep_prob, pr, 0.0)

    # Explicit VMEM residency for priors (lives across all routing iterations).
    priors_ref[...] = pr

    # Routing iteration 0 hoisted: softmax(zeros) over the input-capsule axis is exactly
    # uniform, so the first weighted sum is just a mean over I.
    s = jnp.sum(pr, axis=0) * (1.0 / n_in)              # (OT, Do, TB)
    outputs = _squash(s, axis=1)

    unroll = n_in <= 32
    for _ in range(num_iterations - 1):
        # Fused softmax-weighted sum over input capsules: two accumulators, no full-size
        # logits / exp / probs temporaries.  No max-subtract needed: both priors and
        # outputs are squashed (|.| < 1), so logits are bounded in (-1, 1).
        def body(i, carry):
            num, den = carry
            p_i = priors_ref[i]                         # (OT, Do, TB)
            e = jnp.exp(p_i * outputs)
            return (num + e * p_i, den + e)

        num, den = lax.fori_loop(
            0, n_in, body,
            (jnp.zeros_like(outputs), jnp.zeros_like(outputs)),
            unroll=unroll)
        s = num * pl.reciprocal(den, approx=True)       # probs divide -> EUP reciprocal
        outputs = _squash(s, axis=1)

    o_ref[...] = outputs.astype(o_ref.dtype)            # lane-dense store (TB on lanes)


def routing_forward(x, route_weights, *, random=False, dropout=0.0,
                    random_size=0.01, key=None, num_iterations=2,
                    batch_tile=256,
                    priors_vmem_budget=24 * 1024 * 1024,
                    vmem_limit_bytes=48 * 1024 * 1024):
    """JAX/Pallas equivalent of the capsule-routing forward.

    x: (B, data_in, num_input_capsules); route_weights: (O, I, Do, Di).
    Returns (B, data_out, O), matching torch's squeeze()/transpose(2, 1).
    """
    B, Di, I = x.shape
    O, I_w, Do, Di_w = route_weights.shape
    assert I == I_w and Di == Di_w
    assert Do % 8 == 0, "data_out must be a multiple of 8 (free in-kernel reshape)"
    if (random or dropout > 0.0) and key is None:
        key = jax.random.PRNGKey(0)

    # ---- batch tiling: always lane-dense (multiple of 128), batch on the lane axis ----
    Bp = max(128, ((B + 127) // 128) * 128)
    TB = ((batch_tile + 127) // 128) * 128
    if Bp <= TB:
        TB = Bp
    else:
        Bp = ((Bp + TB - 1) // TB) * TB
    nb = Bp // TB

    # ---- output-capsule tiling: keep the priors scratch (I*OT*Do*TB*4 B) under budget ----
    OT = O
    while OT > 1 and (I * OT * Do * TB * 4 > priors_vmem_budget or O % OT != 0):
        OT -= 1
    no = O // OT

    # v7x: guarantee >=2 grid steps so both TensorCores get work (only if we can stay
    # lane-dense, i.e. TB remains a multiple of 128 after the split).
    if no * nb == 1 and TB % 256 == 0:
        TB //= 2
        nb = Bp // TB

    # ---- weights: (O, I, Do, Di) -> (no, I, OT*Do, Di) bf16, VMEM resident (1 copy) ----
    w = route_weights.astype(jnp.float32)
    if random:
        key, nk = jax.random.split(key)
        w = w + random_size * jax.random.normal(nk, route_weights.shape, jnp.float32)
    w5 = w.reshape(no, OT, I, Do, Di)
    w5 = jnp.transpose(w5, (0, 2, 1, 3, 4))             # (no, I, OT, Do, Di)
    w_r = w5.reshape(no, I, OT * Do, Di).astype(jnp.bfloat16)
    # TODO(synk): if route_weights are reused across calls, precompute w_r once outside.

    # ---- activations: cast to bf16 BEFORE the transpose (halves the wrapper HBM pass) ----
    x_b = jnp.transpose(x.astype(jnp.bfloat16), (2, 1, 0))   # (I, Di, B), batch-last
    if Bp != B:
        x_b = jnp.pad(x_b, ((0, 0), (0, 0), (0, Bp - B)))    # padded lanes dropped below

    has_mask = dropout > 0.0
    inputs = [w_r, x_b]
    in_specs = [
        # Whole weight, single resident VMEM copy: no per-step DMA, no double buffer.
        pl.BlockSpec(memory_space=pltpu.MemorySpace.VMEM),
        pl.BlockSpec((I, Di, TB), lambda o, b: (0, 0, b)),
    ]
    if has_mask:
        key, dk = jax.random.split(key)
        seed = jax.random.randint(dk, (1,), 0, 2 ** 31 - 1, dtype=jnp.int32)
        inputs.append(seed)
        in_specs.append(pl.BlockSpec(memory_space=pltpu.MemorySpace.SMEM))

    kernel = functools.partial(
        _routing_kernel, num_iterations=num_iterations,
        o_tile=OT, data_out=Do, num_in=I, has_mask=has_mask,
        keep_prob=1.0 - dropout)

    out = pl.pallas_call(
        kernel,
        out_shape=jax.ShapeDtypeStruct((O, Do, Bp), jnp.float32),
        grid=(no, nb),
        in_specs=in_specs,
        out_specs=pl.BlockSpec((OT, Do, TB), lambda o, b: (o, 0, b)),
        scratch_shapes=[pltpu.VMEM((I, OT, Do, TB), jnp.float32)],
        compiler_params=pltpu.CompilerParams(
            dimension_semantics=("parallel", "parallel"),
            vmem_limit_bytes=vmem_limit_bytes),
    )(*inputs)

    out = out[:, :, :B]                          # drop batch padding
    out = jnp.transpose(out, (2, 0, 1))          # (B, O, Do): torch pre-squeeze layout

    # Mimic torch: outputs.squeeze(); if 3-D -> transpose(2,1) else unsqueeze(0).transpose(2,1)
    out = jnp.squeeze(out)
    if out.ndim == 3:
        out = jnp.swapaxes(out, 2, 1)
    else:
        out = jnp.swapaxes(out[None, ...], 2, 1)
    return out


def _squash_ref(x, axis):
    sn = jnp.sum(x * x, axis=axis, keepdims=True)
    return (sn / (1.0 + sn)) * x / jnp.sqrt(sn)


def routing_reference(x, route_weights, num_iterations=2):
    """Pure-JAX f32 reference matching the PyTorch forward (random=False, dropout=0)."""
    x_t = jnp.swapaxes(x, 2, 1)                                       # (B, I, Di)
    priors = jnp.einsum('oide,bie->boid', route_weights, x_t,
                        precision=lax.Precision.HIGHEST)              # (B, O, I, Do)
    priors = _squash_ref(priors, axis=-1)
    logits = jnp.zeros_like(priors)
    outputs = None
    for _ in range(num_iterations):
        probs = jax.nn.softmax(logits, axis=2)
        s = jnp.sum(probs * priors, axis=2, keepdims=True)            # (B, O, 1, Do)
        outputs = _squash_ref(s, axis=-1)
        logits = priors * outputs
    out = jnp.squeeze(outputs[:, :, 0, :])
    if out.ndim == 3:
        out = jnp.swapaxes(out, 2, 1)
    else:
        out = jnp.swapaxes(out[None, ...], 2, 1)
    return out


if __name__ == "__main__":
    # small shapes: batch=2, num_input_capsules=8, num_output_capsules=4,
    #               data_in=16, data_out=16
    B, I, O, Di, Do = 2, 8, 4, 16, 16
    key = jax.random.PRNGKey(0)
    kx, kw = jax.random.split(key)

    x = jax.random.normal(kx, (B, Di, I), jnp.float32)                  # torch layout (B, data_in, I)
    route_weights = jax.random.normal(kw, (O, I, Do, Di), jnp.float32)  # ~ torch.randn init

    out = routing_forward(x, route_weights, random=False, dropout=0.0, num_iterations=2)
    out = jax.block_until_ready(out)

    ref = routing_reference(x, route_weights, num_iterations=2)
    assert out.shape == (B, Do, O), out.shape
    # bf16 MXU operands + approx EUP reciprocals vs the HIGHEST-precision f32 reference:
    # outputs are squashed (|.| < 1), observed error is ~1e-3 abs; 2e-2 leaves margin.
    assert jnp.allclose(out, ref, atol=2e-2, rtol=2e-2), "mismatch vs pure-JAX reference"

    print("KERNEL_OK")
</pallas_src>

<mosaic_0001>
module attributes {stable_mosaic.version = 11 : i64} {
  func.func @_routing_kernel(%arg0: i32, %arg1: i32, %arg2: memref<1x8x64x16xbf16, #tpu.memory_space<vmem>>, %arg3: memref<8x16x128xbf16, #tpu.memory_space<vmem>>, %arg4: memref<4x16x128xf32, #tpu.memory_space<vmem>>, %arg5: memref<8x4x16x128xf32, #tpu.memory_space<vmem>>) attributes {dimension_semantics = [#tpu.dimension_semantics<parallel>, #tpu.dimension_semantics<parallel>], iteration_bounds = array<i64: 1, 1>, scalar_prefetch = 0 : i64, scratch_operands = 1 : i64, tpu.core_type = #tpu.core_type<tc>, window_params = [{pipeline_mode = #tpu.pipeline_mode<synchronous>, transform_indices = @transform_0, window_bounds = array<i64: 1, 8, 64, 16>}, {transform_indices = @transform_1, window_bounds = array<i64: 8, 16, 128>}, {transform_indices = @transform_2, window_bounds = array<i64: 4, 16, 128>}]} {
    %0 = arith.index_cast %arg0 : i32 to index
    %c0 = arith.constant 0 : index
    %c0_0 = arith.constant 0 : index
    %c0_1 = arith.constant 0 : index
    %1 = vector.load %arg2[%0, %c0, %c0_0, %c0_1] : memref<1x8x64x16xbf16, #tpu.memory_space<vmem>>, vector<1x8x64x16xbf16>
    %2 = vector.shape_cast %1 : vector<1x8x64x16xbf16> to vector<8x64x16xbf16>
    %c0_2 = arith.constant 0 : index
    %c0_3 = arith.constant 0 : index
    %c0_4 = arith.constant 0 : index
    %3 = vector.load %arg3[%c0_2, %c0_3, %c0_4] : memref<8x16x128xbf16, #tpu.memory_space<vmem>>, vector<8x16x128xbf16>
    %cst = arith.constant dense<0.000000e+00> : vector<8x64x128xf32>
    %4 = tpu.matmul %2, %3, %cst {dimension_numbers = #tpu.dot_dimension_numbers<[2], [1], [1], [2], [0, 0, 0, 1, 1, 2], [0], [0]>} : vector<8x64x16xbf16>, vector<8x16x128xbf16>, vector<8x64x128xf32> -> vector<8x64x128xf32>
    %5 = vector.shape_cast %4 : vector<8x64x128xf32> to vector<8x4x16x128xf32>
    %6 = arith.mulf %5, %5 : vector<8x4x16x128xf32>
    %cst_5 = arith.constant dense<0.000000e+00> : vector<8x4x128xf32>
    %7 = vector.multi_reduction <add>, %6, %cst_5 [2] : vector<8x4x16x128xf32> to vector<8x4x128xf32>
    %8 = vector.shape_cast %7 : vector<8x4x128xf32> to vector<8x4x1x128xf32>
    %9 = math.rsqrt %8 : vector<8x4x1x128xf32>
    %10 = arith.mulf %8, %9 : vector<8x4x1x128xf32>
    %cst_6 = arith.constant 1.000000e+00 : f32
    %11 = vector.broadcast %cst_6 : f32 to vector<8x4x1x128xf32>
    %12 = arith.addf %11, %8 : vector<8x4x1x128xf32>
    %13 = tpu.reciprocal %12 {approx = true} : vector<8x4x1x128xf32> -> vector<8x4x1x128xf32>
    %14 = arith.mulf %10, %13 : vector<8x4x1x128xf32>
    %15 = vector.broadcast %14 : vector<8x4x1x128xf32> to vector<8x4x16x128xf32>
    %16 = arith.mulf %5, %15 : vector<8x4x16x128xf32>
    %c0_7 = arith.constant 0 : index
    %c0_8 = arith.constant 0 : index
    %c0_9 = arith.constant 0 : index
    %c0_10 = arith.constant 0 : index
    %17 = vector.load %arg5[%c0_7, %c0_8, %c0_9, %c0_10] : memref<8x4x16x128xf32, #tpu.memory_space<vmem>>, vector<8x4x16x128xf32>
    tpu.vector_store %arg5[%c0_7, %c0_8, %c0_9, %c0_10], %16 {strides = array<i32>} : memref<8x4x16x128xf32, #tpu.memory_space<vmem>>, vector<8x4x16x128xf32>,
    %cst_11 = arith.constant dense<0.000000e+00> : vector<4x16x128xf32>
    %18 = vector.multi_reduction <add>, %16, %cst_11 [0] : vector<8x4x16x128xf32> to vector<4x16x128xf32>
    %cst_12 = arith.constant 1.250000e-01 : f32
    %19 = vector.broadcast %cst_12 : f32 to vector<4x16x128xf32>
    %20 = arith.mulf %18, %19 : vector<4x16x128xf32>
    %21 = arith.mulf %20, %20 : vector<4x16x128xf32>
    %cst_13 = arith.constant dense<0.000000e+00> : vector<4x128xf32>
    %22 = vector.multi_reduction <add>, %21, %cst_13 [1] : vector<4x16x128xf32> to vector<4x128xf32>
    %23 = vector.shape_cast %22 : vector<4x128xf32> to vector<4x1x128xf32>
    %24 = math.rsqrt %23 : vector<4x1x128xf32>
    %25 = arith.mulf %23, %24 : vector<4x1x128xf32>
    %cst_14 = arith.constant 1.000000e+00 : f32
    %26 = vector.broadcast %cst_14 : f32 to vector<4x1x128xf32>
    %27 = arith.addf %26, %23 : vector<4x1x128xf32>
    %28 = tpu.reciprocal %27 {approx = true} : vector<4x1x128xf32> -> vector<4x1x128xf32>
    %29 = arith.mulf %25, %28 : vector<4x1x128xf32>
    %30 = vector.broadcast %29 : vector<4x1x128xf32> to vector<4x16x128xf32>
    %31 = arith.mulf %20, %30 : vector<4x16x128xf32>
    %cst_15 = arith.constant 0.000000e+00 : f32
    %32 = vector.broadcast %cst_15 : f32 to vector<4x16x128xf32>
    %cst_16 = arith.constant 0.000000e+00 : f32
    %33 = vector.broadcast %cst_16 : f32 to vector<4x16x128xf32>
    %c0_i32 = arith.constant 0 : i32
    %34 = arith.index_cast %c0_i32 : i32 to index
    %c0_17 = arith.constant 0 : index
    %c0_18 = arith.constant 0 : index
    %c0_19 = arith.constant 0 : index
    %35 = vector.load %arg5[%34, %c0_17, %c0_18, %c0_19] : memref<8x4x16x128xf32, #tpu.memory_space<vmem>>, vector<1x4x16x128xf32>
    %36 = vector.shape_cast %35 : vector<1x4x16x128xf32> to vector<4x16x128xf32>
    %37 = arith.mulf %36, %31 : vector<4x16x128xf32>
    %38 = math.exp %37 : vector<4x16x128xf32>
    %39 = arith.mulf %38, %36 : vector<4x16x128xf32>
    %40 = arith.addf %32, %39 : vector<4x16x128xf32>
    %41 = arith.addf %33, %38 : vector<4x16x128xf32>
    %c1_i32 = arith.constant 1 : i32
    %42 = arith.index_cast %c1_i32 : i32 to index
    %c0_20 = arith.constant 0 : index
    %c0_21 = arith.constant 0 : index
    %c0_22 = arith.constant 0 : index
    %43 = vector.load %arg5[%42, %c0_20, %c0_21, %c0_22] : memref<8x4x16x128xf32, #tpu.memory_space<vmem>>, vector<1x4x16x128xf32>
    %44 = vector.shape_cast %43 : vector<1x4x16x128xf32> to vector<4x16x128xf32>
    %45 = arith.mulf %44, %31 : vector<4x16x128xf32>
    %46 = math.exp %45 : vector<4x16x128xf32>
    %47 = arith.mulf %46, %44 : vector<4x16x128xf32>
    %48 = arith.addf %40, %47 : vector<4x16x128xf32>
    %49 = arith.addf %41, %46 : vector<4x16x128xf32>
    %c2_i32 = arith.constant 2 : i32
    %50 = arith.index_cast %c2_i32 : i32 to index
    %c0_23 = arith.constant 0 : index
    %c0_24 = arith.constant 0 : index
    %c0_25 = arith.constant 0 : index
    %51 = vector.load %arg5[%50, %c0_23, %c0_24, %c0_25] : memref<8x4x16x128xf32, #tpu.memory_space<vmem>>, vector<1x4x16x128xf32>
    %52 = vector.shape_cast %51 : vector<1x4x16x128xf32> to vector<4x16x128xf32>
    %53 = arith.mulf %52, %31 : vector<4x16x128xf32>
    %54 = math.exp %53 : vector<4x16x128xf32>
    %55 = arith.mulf %54, %52 : vector<4x16x128xf32>
    %56 = arith.addf %48, %55 : vector<4x16x128xf32>
    %57 = arith.addf %49, %54 : vector<4x16x128xf32>
    %c3_i32 = arith.constant 3 : i32
    %58 = arith.index_cast %c3_i32 : i32 to index
    %c0_26 = arith.constant 0 : index
    %c0_27 = arith.constant 0 : index
    %c0_28 = arith.constant 0 : index
    %59 = vector.load %arg5[%58, %c0_26, %c0_27, %c0_28] : memref<8x4x16x128xf32, #tpu.memory_space<vmem>>, vector<1x4x16x128xf32>
    %60 = vector.shape_cast %59 : vector<1x4x16x128xf32> to vector<4x16x128xf32>
    %61 = arith.mulf %60, %31 : vector<4x16x128xf32>
    %62 = math.exp %61 : vector<4x16x128xf32>
    %63 = arith.mulf %62, %60 : vector<4x16x128xf32>
    %64 = arith.addf %56, %63 : vector<4x16x128xf32>
    %65 = arith.addf %57, %62 : vector<4x16x128xf32>
    %c4_i32 = arith.constant 4 : i32
    %66 = arith.index_cast %c4_i32 : i32 to index
    %c0_29 = arith.constant 0 : index
    %c0_30 = arith.constant 0 : index
    %c0_31 = arith.constant 0 : index
    %67 = vector.load %arg5[%66, %c0_29, %c0_30, %c0_31] : memref<8x4x16x128xf32, #tpu.memory_space<vmem>>, vector<1x4x16x128xf32>
    %68 = vector.shape_cast %67 : vector<1x4x16x128xf32> to vector<4x16x128xf32>
    %69 = arith.mulf %68, %31 : vector<4x16x128xf32>
    %70 = math.exp %69 : vector<4x16x128xf32>
    %71 = arith.mulf %70, %68 : vector<4x16x128xf32>
    %72 = arith.addf %64, %71 : vector<4x16x128xf32>
    %73 = arith.addf %65, %70 : vector<4x16x128xf32>
    %c5_i32 = arith.constant 5 : i32
    %74 = arith.index_cast %c5_i32 : i32 to index
    %c0_32 = arith.constant 0 : index
    %c0_33 = arith.constant 0 : index
    %c0_34 = arith.constant 0 : index
    %75 = vector.load %arg5[%74, %c0_32, %c0_33, %c0_34] : memref<8x4x16x128xf32, #tpu.memory_space<vmem>>, vector<1x4x16x128xf32>
    %76 = vector.shape_cast %75 : vector<1x4x16x128xf32> to vector<4x16x128xf32>
    %77 = arith.mulf %76, %31 : vector<4x16x128xf32>
    %78 = math.exp %77 : vector<4x16x128xf32>
    %79 = arith.mulf %78, %76 : vector<4x16x128xf32>
    %80 = arith.addf %72, %79 : vector<4x16x128xf32>
    %81 = arith.addf %73, %78 : vector<4x16x128xf32>
    %c6_i32 = arith.constant 6 : i32
    %82 = arith.index_cast %c6_i32 : i32 to index
    %c0_35 = arith.constant 0 : index
    %c0_36 = arith.constant 0 : index
    %c0_37 = arith.constant 0 : index
    %83 = vector.load %arg5[%82, %c0_35, %c0_36, %c0_37] : memref<8x4x16x128xf32, #tpu.memory_space<vmem>>, vector<1x4x16x128xf32>
    %84 = vector.shape_cast %83 : vector<1x4x16x128xf32> to vector<4x16x128xf32>
    %85 = arith.mulf %84, %31 : vector<4x16x128xf32>
    %86 = math.exp %85 : vector<4x16x128xf32>
    %87 = arith.mulf %86, %84 : vector<4x16x128xf32>
    %88 = arith.addf %80, %87 : vector<4x16x128xf32>
    %89 = arith.addf %81, %86 : vector<4x16x128xf32>
    %c7_i32 = arith.constant 7 : i32
    %90 = arith.index_cast %c7_i32 : i32 to index
    %c0_38 = arith.constant 0 : index
    %c0_39 = arith.constant 0 : index
    %c0_40 = arith.constant 0 : index
    %91 = vector.load %arg5[%90, %c0_38, %c0_39, %c0_40] : memref<8x4x16x128xf32, #tpu.memory_space<vmem>>, vector<1x4x16x128xf32>
    %92 = vector.shape_cast %91 : vector<1x4x16x128xf32> to vector<4x16x128xf32>
    %93 = arith.mulf %92, %31 : vector<4x16x128xf32>
    %94 = math.exp %93 : vector<4x16x128xf32>
    %95 = arith.mulf %94, %92 : vector<4x16x128xf32>
    %96 = arith.addf %88, %95 : vector<4x16x128xf32>
    %97 = arith.addf %89, %94 : vector<4x16x128xf32>
    %c8_i32 = arith.constant 8 : i32
    %98 = tpu.reciprocal %97 {approx = true} : vector<4x16x128xf32> -> vector<4x16x128xf32>
    %99 = arith.mulf %96, %98 : vector<4x16x128xf32>
    %100 = arith.mulf %99, %99 : vector<4x16x128xf32>
    %cst_41 = arith.constant dense<0.000000e+00> : vector<4x128xf32>
    %101 = vector.multi_reduction <add>, %100, %cst_41 [1] : vector<4x16x128xf32> to vector<4x128xf32>
    %102 = vector.shape_cast %101 : vector<4x128xf32> to vector<4x1x128xf32>
    %103 = math.rsqrt %102 : vector<4x1x128xf32>
    %104 = arith.mulf %102, %103 : vector<4x1x128xf32>
    %cst_42 = arith.constant 1.000000e+00 : f32
    %105 = vector.broadcast %cst_42 : f32 to vector<4x1x128xf32>
    %106 = arith.addf %105, %102 : vector<4x1x128xf32>
    %107 = tpu.reciprocal %106 {approx = true} : vector<4x1x128xf32> -> vector<4x1x128xf32>
    %108 = arith.mulf %104, %107 : vector<4x1x128xf32>
    %109 = vector.broadcast %108 : vector<4x1x128xf32> to vector<4x16x128xf32>
    %110 = arith.mulf %99, %109 : vector<4x16x128xf32>
    %c0_43 = arith.constant 0 : index
    %c0_44 = arith.constant 0 : index
    %c0_45 = arith.constant 0 : index
    %111 = vector.load %arg4[%c0_43, %c0_44, %c0_45] : memref<4x16x128xf32, #tpu.memory_space<vmem>>, vector<4x16x128xf32>
    tpu.vector_store %arg4[%c0_43, %c0_44, %c0_45], %110 {strides = array<i32>} : memref<4x16x128xf32, #tpu.memory_space<vmem>>, vector<4x16x128xf32>,
    return
  }
  func.func @transform_0(%arg0: i32, %arg1: i32) -> (i32, i32, i32, i32) {
    %c0_i32 = arith.constant 0 : i32
    %c0_i32_0 = arith.constant 0 : i32
    %c0_i32_1 = arith.constant 0 : i32
    %c0_i32_2 = arith.constant 0 : i32
    %c0_i32_3 = arith.constant 0 : i32
    return %c0_i32, %c0_i32_0, %c0_i32_1, %c0_i32_2 : i32, i32, i32, i32
  }
  func.func @transform_1(%arg0: i32, %arg1: i32) -> (i32, i32, i32) {
    %c0_i32 = arith.constant 0 : i32
    %c0_i32_0 = arith.constant 0 : i32
    %c0_i32_1 = arith.constant 0 : i32
    return %c0_i32, %c0_i32_0, %arg1 : i32, i32, i32
  }
  func.func @transform_2(%arg0: i32, %arg1: i32) -> (i32, i32, i32) {
    %c0_i32 = arith.constant 0 : i32
    %c0_i32_0 = arith.constant 0 : i32
    return %arg0, %c0_i32, %arg1 : i32, i32, i32
  }
}

</mosaic_0001>

<bundles_post_ra>
// kernel: tpu_custom_call.1
= control target key start
LH: loop header
LB: loop body
LE: loop exit
PB: predicated region body
PF: predicated region fallthrough
CT: control target
= control target key end

     0   :  { %vm122_vm0 = vcmask 130048   ;;  %s3806_s0 = inlined_call_operand.vmem [shape: bf16[1,8,64,16], index: 0, kind: input, shape index: {}]   ;;  %s3807_s1 = inlined_call_operand.vmem [shape: bf16[8,16,128], index: 1, kind: input, shape index: {}]   ;;  %s3808_s2 = inlined_call_operand.hbm [shape: f32[4,16,128], index: 2, kind: output, shape index: {}]  }
   0x1   :  { %v2379_v0 = vld [vmem:[%s3807_s1] sm:$0xff]   ;;  %v2380_v1 = vld [vmem:[%s3807_s1 + $0x8] sm:$0xff]   ;;  %v2385_v6 = vld [vmem:[%s3807_s1 + $0x10] sm:$0xff]  }
   0x2   :  { %2296 = vmatprep.subr.bf16.mxu0 %v2379_v0  ;;  %v2381_v2 = vld [vmem:[%s3806_s0] sm:$0xff]   ;;  %2306 = vmatprep.subr.bf16.mxu1 %v2380_v1  ;;  %v2383_v4 = vld [vmem:[%s3806_s0 + $0x8] sm:$0xff]   ;;  %v2386_v7 = vld [vmem:[%s3807_s1 + $0x18] sm:$0xff]  }
   0x3   :  { %2297 = vmatpush3.bf16.msra.mxu0 %v2379_v0  ;;  %v2382_v3 = vld [vmem:[%s3806_s0 + $0x20] sm:$0xff]   ;;  %2307 = vmatpush3.bf16.msra.mxu1 %v2380_v1  ;;  %v2384_v5 = vld [vmem:[%s3806_s0 + $0x28] sm:$0xff]   ;;  %v2387_v8 = vld [vmem:[%s3806_s0 + $0x10] sm:$0xff]  }
   0x4   :  { %2298 = vmatprep.mubr.msk.bf16.mxu0 %vm122_vm0, %v2381_v2  ;;  %2308 = vmatprep.mubr.msk.bf16.mxu1 %vm122_vm0, %v2382_v3  ;;  %v2388_v9 = vld [vmem:[%s3806_s0 + $0x30] sm:$0xff]   ;;  %v2389_v10 = vld [vmem:[%s3806_s0 + $0x18] sm:$0xff]   ;;  %v2391_v12 = vld [vmem:[%s3806_s0 + $0x40] sm:$0xff]  }
   0x5   :  { %2316 = vmatprep.subr.bf16.mxu0 %v2385_v6  ;;  %2326 = vmatprep.subr.bf16.mxu1 %v2386_v7  ;;  %v2390_v11 = vld [vmem:[%s3806_s0 + $0x38] sm:$0xff]   ;;  %v2392_v13 = vld [vmem:[%s3806_s0 + $0x60] sm:$0xff]   ;;  %v2396_v15 = vld [vmem:[%s3807_s1 + $0x28] sm:$0xff]  }
   0x6   :  { %2299 = vmatmul.mubr.msk.bf16.vlgmr.msra.gmra.mrb[0].mxu0 %vm122_vm0, %v2383_v4  ;;  %2309 = vmatmul.mubr.msk.bf16.vlgmr.msra.gmra.mrb[0].mxu1 %vm122_vm0, %v2384_v5  ;;  %v2395_v14 = vld [vmem:[%s3807_s1 + $0x20] sm:$0xff]   ;;  %v2393_v16 = vld [vmem:[%s3806_s0 + $0x48] sm:$0xff]   ;;  %v2397_v18 = vld [vmem:[%s3806_s0 + $0x50] sm:$0xff]  }
   0x7   :  { %2317 = vmatpush3.bf16.msra.mxu0 %v2385_v6  ;;  %2327 = vmatpush3.bf16.msra.mxu1 %v2386_v7  ;;  %v2394_v17 = vld [vmem:[%s3806_s0 + $0x68] sm:$0xff]   ;;  %v2398_v19 = vld [vmem:[%s3806_s0 + $0x70] sm:$0xff]   ;;  %v2399_v20 = vld [vmem:[%s3806_s0 + $0x58] sm:$0xff]  }
   0x8   :  { %2302 = vmatprep.mubr.msk.bf16.mxu0 %vm122_vm0, %v2387_v8  ;;  %2312 = vmatprep.mubr.msk.bf16.mxu1 %vm122_vm0, %v2388_v9  ;;  %v2400_v21 = vld [vmem:[%s3806_s0 + $0x78] sm:$0xff]   ;;  %v2401_v22 = vld [vmem:[%s3806_s0 + $0x80] sm:$0xff]   ;;  %v2405_v23 = vld [vmem:[%s3807_s1 + $0x30] sm:$0xff]  }
   0x9   :  { %2336 = vmatprep.subr.bf16.mxu0 %v2395_v14  ;;  %2346 = vmatprep.subr.bf16.mxu1 %v2396_v15  ;;  %v2406_v24 = vld [vmem:[%s3807_s1 + $0x38] sm:$0xff]   ;;  %v2402_v25 = vld [vmem:[%s3806_s0 + $0xa0] sm:$0xff]   ;;  %v2403_v26 = vld [vmem:[%s3806_s0 + $0x88] sm:$0xff]  }
   0xa   :  { %v2404_v27 = vld [vmem:[%s3806_s0 + $0xa8] sm:$0xff]   ;;  %v2407_v28 = vld [vmem:[%s3806_s0 + $0x90] sm:$0xff]  }
   0xb   :  { %v2408_v29 = vld [vmem:[%s3806_s0 + $0xb0] sm:$0xff]  }
   0xe   :  { %2303 = vmatmul.mubr.msk.bf16.gmra.mrb[4].mxu0 %vm122_vm0, %v2389_v10  ;;  %2313 = vmatmul.mubr.msk.bf16.gmra.mrb[4].mxu1 %vm122_vm0, %v2390_v11 }
   0xf   :  { %2318 = vmatprep.mubr.msk.bf16.mxu0 %vm122_vm0, %v2391_v12  ;;  %2328 = vmatprep.mubr.msk.bf16.mxu1 %vm122_vm0, %v2392_v13 }
  0x16   :  { %2319 = vmatmul.mubr.msk.bf16.vlgmr.msra.gmra.mrb[8].mxu0 %vm122_vm0, %v2393_v16  ;;  %2329 = vmatmul.mubr.msk.bf16.vlgmr.msra.gmra.mrb[8].mxu1 %vm122_vm0, %v2394_v17 }
  0x17   :  { %2337 = vmatpush3.bf16.msra.mxu0 %v2395_v14  ;;  %2347 = vmatpush3.bf16.msra.mxu1 %v2396_v15 }
  0x18   :  { %2322 = vmatprep.mubr.msk.bf16.mxu0 %vm122_vm0, %v2397_v18  ;;  %2332 = vmatprep.mubr.msk.bf16.mxu1 %vm122_vm0, %v2398_v19 }
  0x19   :  { %2356 = vmatprep.subr.bf16.mxu0 %v2405_v23  ;;  %2366 = vmatprep.subr.bf16.mxu1 %v2406_v24 }
  0x1e   :  { %2323 = vmatmul.mubr.msk.bf16.gmra.mrb[12].mxu0 %vm122_vm0, %v2399_v20  ;;  %2333 = vmatmul.mubr.msk.bf16.gmra.mrb[12].mxu1 %vm122_vm0, %v2400_v21 }
  0x1f   :  { %2338 = vmatprep.mubr.msk.bf16.mxu0 %vm122_vm0, %v2401_v22  ;;  %2348 = vmatprep.mubr.msk.bf16.mxu1 %vm122_vm0, %v2402_v25 }
  0x26   :  { %2339 = vmatmul.mubr.msk.bf16.vlgmr.msra.gmra.mrb[16].mxu0 %vm122_vm0, %v2403_v26  ;;  %2349 = vmatmul.mubr.msk.bf16.vlgmr.msra.gmra.mrb[16].mxu1 %vm122_vm0, %v2404_v27 }
  0x27   :  { %2357 = vmatpush3.bf16.msra.mxu0 %v2405_v23  ;;  %2367 = vmatpush3.bf16.msra.mxu1 %v2406_v24 }
  0x28   :  { %2342 = vmatprep.mubr.msk.bf16.mxu0 %vm122_vm0, %v2407_v28 }
  0x29   :  { %7 = vsyncpa [#allocation4], 0  ;;  %2352 = vmatprep.mubr.msk.bf16.mxu1 %vm122_vm0, %v2408_v29  ;;  %v2409_v30 = vld [vmem:[%s3806_s0 + $0x98] sm:$0xff]   ;;  %v2411_v32 = vld [vmem:[%s3806_s0 + $0xc0] sm:$0xff]  }
  0x2a   :  { %v2410_v31 = vld [vmem:[%s3806_s0 + $0xb8] sm:$0xff]   ;;  %v2412_v33 = vld [vmem:[%s3806_s0 + $0xe0] sm:$0xff]   ;;  %v2413_v34 = vld [vmem:[%s3806_s0 + $0xc8] sm:$0xff]  }
  0x2b   :  { %v2414_v35 = vld [vmem:[%s3806_s0 + $0xe8] sm:$0xff]   ;;  %v2415_v36 = vld [vmem:[%s3806_s0 + $0xd0] sm:$0xff]   ;;  %v2417_v38 = vld [vmem:[%s3806_s0 + $0xd8] sm:$0xff]  }
  0x2c   :  { %v2416_v37 = vld [vmem:[%s3806_s0 + $0xf0] sm:$0xff]   ;;  %v2418_v39 = vld [vmem:[%s3806_s0 + $0xf8] sm:$0xff]   ;;  %s2747_s0 = smov [#allocation3]  }
  0x2d   :  { %s2173_s4 = sshll.u32 %s2747_s0, 4  ;;  %s2174_s4 = int_to_ptr.vmem [resolvable:$true] %s2173_s4 }
  0x2e   :  { %2343 = vmatmul.mubr.msk.bf16.gmra.mrb[20].mxu0 %vm122_vm0, %v2409_v30  ;;  %2353 = vmatmul.mubr.msk.bf16.gmra.mrb[20].mxu1 %vm122_vm0, %v2410_v31  ;;  %s2723_s5 = scalar_lea.vmem %s2174_s4, 1024  ;;  %p2728_p1 = scmp.lt.s32.totalorder %s2174_s4, %s2174_s4 }
  0x2f   :  { %2358 = vmatprep.mubr.msk.bf16.mxu0 %vm122_vm0, %v2411_v32  ;;  %2368 = vmatprep.mubr.msk.bf16.mxu1 %vm122_vm0, %v2412_v33  ;;  %p2724_p0 = scmp.ne.s32.totalorder %s2174_s4, %s2723_s5  ;;  %p2729_p2 = scmp.lt.s32.totalorder %s2723_s5, %s2723_s5 }
  0x31   :  { %p2730_p3 = por %p2729_p2, %p2728_p1 }
  0x33   :  { %p2731_p4 = pnand %p2730_p3, %p2724_p0 }
  0x36   :  { %2359 = vmatmul.mubr.msk.bf16.vlgmr.msra.gmra.mrb[24].mxu0 %vm122_vm0, %v2413_v34  ;;  %2369 = vmatmul.mubr.msk.bf16.vlgmr.msra.gmra.mrb[24].mxu1 %vm122_vm0, %v2414_v35 }
  0x37   :  { %2362 = vmatprep.mubr.msk.bf16.mxu0 %vm122_vm0, %v2415_v36  ;;  %2372 = vmatprep.mubr.msk.bf16.mxu1 %vm122_vm0, %v2416_v37 }
  0x3e   :  { %2363 = vmatmul.mubr.msk.bf16.gmra.mrb[28].mxu0 %vm122_vm0, %v2417_v38  ;;  %2373 = vmatmul.mubr.msk.bf16.gmra.mrb[28].mxu1 %vm122_vm0, %v2418_v39 }
  0xd9   :  { %v2917_v40 = vpop.f32.mrb[0].mxu0  ;;  %v2919_v41 = vpop.f32.mrb[0].mxu1 }
  0xda   :  { %v2921_v42 = vpop.f32.mrb[1].mxu0  ;;  %v931_v43 = vmul.f32 %v2919_v41, %v2919_v41  ;;  %v2925_v44 = vpop.f32.mrb[1].mxu1  ;;  %v923_v46 = vmul.f32 %v2917_v40, %v2917_v40 }
  0xdb   :  { %v2927_v45 = vpop.f32.mrb[2].mxu0  ;;  %v929_v47 = vmul.f32 %v2925_v44, %v2925_v44  ;;  %v2935_v49 = vpop.f32.mrb[2].mxu1  ;;  %v921_v51 = vmul.f32 %v2921_v42, %v2921_v42 }
  0xdc   :  { %v924_v48 = vmul.f32 %v2927_v45, %v2927_v45  ;;  %v2937_v50 = vpop.f32.mrb[3].mxu0  ;;  %v932_v52 = vmul.f32 %v2935_v49, %v2935_v49  ;;  %v2945_v54 = vpop.f32.mrb[3].mxu1 }
  0xdd   :  { %v922_v53 = vmul.f32 %v2937_v50, %v2937_v50  ;;  %v930_v56 = vmul.f32 %v2945_v54, %v2945_v54 }
  0xde   :  { %v992_v55 = vadd.f32 %v924_v48, %v923_v46  ;;  %v1020_v57 = vadd.f32 %v932_v52, %v931_v43 }
  0xdf   :  { %v985_v58 = vadd.f32 %v922_v53, %v921_v51  ;;  %v1013_v60 = vadd.f32 %v930_v56, %v929_v47 }
  0xe0   :  { %v993_v59 = vrot.slane %v992_v55, 4  ;;  %v1021_v61 = vrot.slane %v1020_v57, 4 }
  0xe1   :  { %v986_v62 = vrot.slane %v985_v58, 4  ;;  %v2949_v63 = vpop.f32.mrb[4].mxu0  ;;  %v1014_v1 = vrot.slane %v1013_v60, 4  ;;  %v2953_v3 = vpop.f32.mrb[4].mxu1 }
  0xe2   :  { %v994_v0 = vadd.f32 %v993_v59, %v992_v55  ;;  %v927_v2 = vmul.f32 %v2949_v63, %v2949_v63  ;;  %v2955_v4 = vpop.f32.mrb[5].mxu0  ;;  %v1022_v5 = vadd.f32 %v1021_v61, %v1020_v57  ;;  %v935_v7 = vmul.f32 %v2953_v3, %v2953_v3  ;;  %v2961_v9 = vpop.f32.mrb[5].mxu1 }
  0xe3   :  { %v987_v6 = vadd.f32 %v986_v62, %v985_v58  ;;  %v925_v8 = vmul.f32 %v2955_v4, %v2955_v4  ;;  %v2963_v10 = vpop.f32.mrb[6].mxu0  ;;  %v1015_v12 = vadd.f32 %v1014_v1, %v1013_v60  ;;  %v933_v13 = vmul.f32 %v2961_v9, %v2961_v9  ;;  %v2969_v15 = vpop.f32.mrb[6].mxu1 }
  0xe4   :  { %v995_v11 = vrot.slane %v994_v0, 2  ;;  %v928_v14 = vmul.f32 %v2963_v10, %v2963_v10  ;;  %v2971_v16 = vpop.f32.mrb[7].mxu0  ;;  %v1023_v17 = vrot.slane %v1022_v5, 2  ;;  %v936_v19 = vmul.f32 %v2969_v15, %v2969_v15  ;;  %v2977_v21 = vpop.f32.mrb[7].mxu1 }
  0xe5   :  { %v988_v18 = vrot.slane %v987_v6, 2  ;;  %v926_v20 = vmul.f32 %v2971_v16, %v2971_v16  ;;  %v1016_v23 = vrot.slane %v1015_v12, 2  ;;  %v934_v25 = vmul.f32 %v2977_v21, %v2977_v21 }
  0xe6   :  { %v996_v22 = vadd.f32 %v995_v11, %v994_v0  ;;  %v1006_v24 = vadd.f32 %v928_v14, %v927_v2  ;;  %v1024_v26 = vadd.f32 %v1023_v17, %v1022_v5  ;;  %v1034_v28 = vadd.f32 %v936_v19, %v935_v7 }
  0xe7   :  { %v989_v27 = vadd.f32 %v988_v18, %v987_v6  ;;  %v999_v29 = vadd.f32 %v926_v20, %v925_v8  ;;  %v1017_v31 = vadd.f32 %v1016_v23, %v1015_v12  ;;  %v1027_v33 = vadd.f32 %v934_v25, %v933_v13 }
  0xe8   :  { %v997_v30 = vrot.slane %v996_v22, 1  ;;  %v1007_v32 = vrot.slane %v1006_v24, 4  ;;  %v1025_v34 = vrot.slane %v1024_v26, 1  ;;  %v1035_v36 = vrot.slane %v1034_v28, 4 }
  0xe9   :  { %v990_v35 = vrot.slane %v989_v27, 1  ;;  %v1000_v37 = vrot.slane %v999_v29, 4  ;;  %v2981_v38 = vpop.f32.mrb[8].mxu0  ;;  %v1018_v43 = vrot.slane %v1017_v31, 1  ;;  %v1028_v47 = vrot.slane %v1027_v33, 4  ;;  %v2985_v48 = vpop.f32.mrb[8].mxu1 }
  0xea   :  { %v2983_v39 = vadd.f32 %v997_v30, %v996_v22  ;;  %v1008_v46 = vadd.f32 %v1007_v32, %v1006_v24  ;;  %v2987_v51 = vpop.f32.mrb[9].mxu0  ;;  %v2989_v52 = vadd.f32 %v1025_v34, %v1024_v26  ;;  %v1036_v55 = vadd.f32 %v1035_v36, %v1034_v28  ;;  %v2993_v57 = vpop.f32.mrb[9].mxu1 }
  0xeb   :  { %v2991_v53 = vadd.f32 %v990_v35, %v989_v27  ;;  %v1001_v56 = vadd.f32 %v1000_v37, %v999_v29  ;;  %v2995_v58 = vpop.f32.mrb[10].mxu0  ;;  %v2999_v60 = vadd.f32 %v1018_v43, %v1017_v31  ;;  %v3001_v62 = vpop.f32.mrb[10].mxu1  ;;  %v1029_v13 = vadd.f32 %v1028_v47, %v1027_v33 }
  0xec   :  { %2419 = vrsqrt.f32 %v2983_v39  ;;  %v1274_v59 = vadd.f32 1.0, %v2983_v39  ;;  %v1009_v61 = vrot.slane %v1008_v46, 2  ;;  %v3003_v0 = vpop.f32.mrb[11].mxu0  ;;  %v1278_v1 = vadd.f32 1.0, %v2989_v52  ;;  %v3008_v6 = vpop.f32.mrb[11].mxu1 }
  0xed   :  { %2421 = vrsqrt.f32 %v2989_v52  ;;  %v1273_v2 = vadd.f32 1.0, %v2991_v53  ;;  %v1037_v5 = vrot.slane %v1036_v55, 2  ;;  %v1277_v7 = vadd.f32 1.0, %v2999_v60 }
  0xee   :  { %2423 = vrcp.f32 %v1274_v59  ;;  %v1010_v8 = vadd.f32 %v1009_v61, %v1008_v46  ;;  %v1002_v11 = vrot.slane %v1001_v56, 2  ;;  %v939_v14 = vmul.f32 %v2981_v38, %v2981_v38 }
  0xef   :  { %2425 = vrcp.f32 %v1278_v1  ;;  %v1038_v12 = vadd.f32 %v1037_v5, %v1036_v55  ;;  %v947_v19 = vmul.f32 %v2985_v48, %v2985_v48  ;;  %v1030_v22 = vrot.slane %v1029_v13, 2 }
  0xf0   :  { %2427 = vrsqrt.f32 %v2991_v53  ;;  %v1011_v17 = vrot.slane %v1010_v8, 1  ;;  %v1003_v18 = vadd.f32 %v1002_v11, %v1001_v56  ;;  %v937_v23 = vmul.f32 %v2987_v51, %v2987_v51 }
  0xf1   :  { %2429 = vrcp.f32 %v1273_v2  ;;  %v1039_v20 = vrot.slane %v1038_v12, 1  ;;  %v3018_v24 = vpop.f32.mrb[12].mxu0  ;;  %v3025_v27 = vmul.f32 %v2993_v57, %v2993_v57  ;;  %v3027_v28 = vpop.f32.mrb[12].mxu1  ;;  %v1031_v31 = vadd.f32 %v1030_v22, %v1029_v13 }
  0xf2   :  { %2431 = vrsqrt.f32 %v2999_v60  ;;  %v3021_v25 = vadd.f32 %v1011_v17, %v1010_v8  ;;  %v1004_v26 = vrot.slane %v1003_v18, 1  ;;  %v3029_v29 = vpop.f32.mrb[13].mxu0  ;;  %v940_v32 = vmul.f32 %v2995_v58, %v2995_v58  ;;  %v3035_v33 = vpop.f32.mrb[13].mxu1 }
  0xf3   :  { %2433 = vrcp.f32 %v1277_v7  ;;  %v3031_v30 = vadd.f32 %v1039_v20, %v1038_v12  ;;  %v3037_v34 = vpop.f32.mrb[14].mxu0  ;;  %v948_v37 = vmul.f32 %v3001_v62, %v3001_v62  ;;  %v3045_v43 = vpop.f32.mrb[14].mxu1  ;;  %v1032_v55 = vrot.slane %v1031_v31, 1 }
  0xf4   :  { %2435 = vrsqrt.f32 %v3021_v25  ;;  %v1276_v35 = vadd.f32 1.0, %v3021_v25  ;;  %v3041_v36 = vadd.f32 %v1004_v26, %v1003_v18  ;;  %v3047_v46 = vpop.f32.mrb[15].mxu0  ;;  %v1048_v56 = vadd.f32 %v940_v32, %v939_v14  ;;  %v3051_v59 = vpop.f32.mrb[15].mxu1 }
  0xf5   :  { %2437 = vrsqrt.f32 %v3031_v30  ;;  %v1280_v47 = vadd.f32 1.0, %v3031_v30  ;;  %v1076_v2 = vadd.f32 %v948_v37, %v947_v19  ;;  %v938_v5 = vmul.f32 %v3003_v0, %v3003_v0 }
  0xf6   :  { %v2420_v61 = vpop.eup %2419  ;;  %2439 = vrcp.f32 %v1276_v35  ;;  %v1275_v1 = vadd.f32 1.0, %v3041_v36  ;;  %v3057_v11 = vadd.f32 %v1032_v55, %v1031_v31  ;;  %v1049_v12 = vrot.slane %v1048_v56, 4 }
  0xf7   :  { %v2422_v7 = vpop.eup %2421  ;;  %v1242_v8 = vmul.f32 %v2420_v61, %v2983_v39  ;;  %2441 = vrcp.f32 %v1280_v47  ;;  %v1077_v17 = vrot.slane %v1076_v2, 4  ;;  %v1041_v18 = vadd.f32 %v938_v5, %v937_v23 }
  0xf8   :  { %v2424_v13 = vpop.eup %2423  ;;  %v1246_v14 = vmul.f32 %v2422_v7, %v2989_v52  ;;  %2443 = vrsqrt.f32 %v3041_v36  ;;  %v1279_v19 = vadd.f32 1.0, %v3057_v11  ;;  %v1050_v26 = vadd.f32 %v1049_v12, %v1048_v56 }
  0xf9   :  { %v2426_v20 = vpop.eup %2425  ;;  %v1338_v22 = vmul.f32 %v2424_v13, %v1242_v8  ;;  %2445 = vrcp.f32 %v1275_v1  ;;  %v3062_v32 = vpop.f32.mrb[16].mxu0  ;;  %v1078_v31 = vadd.f32 %v1077_v17, %v1076_v2  ;;  %v1042_v37 = vrot.slane %v1041_v18, 4 }
  0xfa   :  { %v2428_v39 = vpop.eup %2427  ;;  %v1342_v35 = vmul.f32 %v2426_v20, %v1246_v14  ;;  %2447 = vrsqrt.f32 %v3057_v11  ;;  %v3065_v47 = vpop.f32.mrb[16].mxu1  ;;  %v1051_v12 = vrot.slane %v1050_v26, 2 }
  0xfb   :  { %v3067_v52 = vpop.f32.mrb[17].mxu0  ;;  %v2430_v55 = vpop.eup %2429  ;;  %v3070_v23 = vmul.f32 %v2917_v40, %v1338_v22  ;;  %v3073_v61 = vmul.f32 %v2927_v45, %v1338_v22  ;;  %v1241_v56 = vmul.f32 %v2428_v39, %v2991_v53  ;;  %2449 = vrcp.f32 %v1279_v19 }
  0xfc   :  { %v3076_v1 = vpop.f32.mrb[17].mxu1  ;;  %v3078_v5 = vpop.f32.mrb[18].mxu0  ;;  %v3081_v7 = vmul.f32 %v2919_v41, %v1342_v35  ;;  %v3084_v8 = vmul.f32 %v2935_v49, %v1342_v35  ;;  %v1079_v40 = vrot.slane %v1078_v31, 2  ;;  %v1043_v20 = vadd.f32 %v1042_v37, %v1041_v18 }
  0xfd   :  { %3912 = vst [vmem:[#allocation6_spill] sm:$0xff] %v3070_v23  ;;  %3913 = vst [vmem:[#allocation7_spill] sm:$0xff] %v3073_v61  ;;  %v2432_v2 = vpop.eup %2431  ;;  %v3086_v13 = vpop.f32.mrb[18].mxu1  ;;  %v1337_v53 = vmul.f32 %v2430_v55, %v1241_v56  ;;  %v946_v22 = vmul.f32 %v3008_v6, %v3008_v6  ;;  %v1052_v39 = vadd.f32 %v1051_v12, %v1050_v26 }
  0xfe   :  { %3914 = vst [vmem:[#allocation8_spill] sm:$0xff] %v3081_v7  ;;  %3915 = vst [vmem:[#allocation9_spill] sm:$0xff] %v3084_v8  ;;  %v3088_v45 = vpop.f32.mrb[19].mxu0  ;;  %v2434_v14 = vpop.eup %2433  ;;  %v1245_v17 = vmul.f32 %v2432_v2, %v2999_v60  ;;  %v1080_v49 = vadd.f32 %v1079_v40, %v1078_v31  ;;  %v1044_v2 = vrot.slane %v1043_v20, 2 }
  0xff   :  { %v3093_v19 = vpop.f32.mrb[19].mxu1  ;;  %v2436_v41 = vpop.eup %2435  ;;  %v3096_v8 = vmul.f32 %v1337_v53, %v2921_v42  ;;  %v3099_v61 = vmul.f32 %v1337_v53, %v2937_v50  ;;  %v1053_v37 = vrot.slane %v1052_v39, 1  ;;  %v1069_v50 = vadd.f32 %v946_v22, %v3025_v27 }
 0x100   :  { %v2438_v35 = vpop.eup %2437  ;;  %v1341_v7 = vmul.f32 %v2434_v14, %v1245_v17  ;;  %v1244_v55 = vmul.f32 %v2436_v41, %v3021_v25  ;;  %v1081_v56 = vrot.slane %v1080_v49, 1 }
 0x101   :  { %3916 = vst [vmem:[#allocation10_spill] sm:$0xff] %v3096_v8  ;;  %3917 = vst [vmem:[#allocation11_spill] sm:$0xff] %v3099_v61  ;;  %v2440_v60 = vpop.eup %2439  ;;  %v1248_v18 = vmul.f32 %v2438_v35, %v3031_v30  ;;  %v3110_v12 = vpop.f32.mrb[20].mxu0  ;;  %v1054_v14 = vadd.f32 %v1053_v37, %v1052_v39  ;;  %v1045_v30 = vadd.f32 %v1044_v2, %v1043_v20 }
 0x102   :  { %v2442_v23 = vpop.eup %2441  ;;  %v3104_v26 = vmul.f32 %v1341_v7, %v2925_v44  ;;  %v3107_v31 = vmul.f32 %v1341_v7, %v2945_v54  ;;  %v1340_v42 = vmul.f32 %v2440_v60, %v1244_v55  ;;  %v3112_v53 = vadd.f32 %v1081_v56, %v1080_v49  ;;  %v3114_v17 = vpop.f32.mrb[20].mxu1 }
 0x103   :  { %v2444_v40 = vpop.eup %2443  ;;  %v1344_v25 = vmul.f32 %v2442_v23, %v1248_v18  ;;  %3920 = vst [vmem:[#allocation14_spill] sm:$0xff] %v3114_v17  ;;  %v3116_v41 = vpop.f32.mrb[21].mxu0  ;;  %2451 = vrsqrt.f32 %v1054_v14  ;;  %v1282_v60 = vadd.f32 1.0, %v1054_v14 }
 0x104   :  { %3918 = vst [vmem:[#allocation12_spill] sm:$0xff] %v3104_v26  ;;  %3919 = vst [vmem:[#allocation13_spill] sm:$0xff] %v3107_v31  ;;  %v2446_v44 = vpop.eup %2445  ;;  %v3119_v35 = vmul.f32 %v2949_v63, %v1340_v42  ;;  %v3122_v54 = vmul.f32 %v2963_v10, %v1340_v42  ;;  %v3124_v27 = vpop.f32.mrb[21].mxu1  ;;  %v1243_v39 = vmul.f32 %v2444_v40, %v3041_v36  ;;  %2453 = vrsqrt.f32 %v3112_v53 }
 0x105   :  { %3923 = vst [vmem:[#allocation17_spill] sm:$0xff] %v3124_v27  ;;  %v3126_v7 = vpop.f32.mrb[22].mxu0  ;;  %v2448_v23 = vpop.eup %2447  ;;  %v3129_v22 = vmul.f32 %v2953_v3, %v1344_v25  ;;  %v3132_v20 = vmul.f32 %v2969_v15, %v1344_v25  ;;  %v1286_v18 = vadd.f32 1.0, %v3112_v53  ;;  %v1046_v15 = vrot.slane %v1045_v30, 1 }
 0x106   :  { %3921 = vst [vmem:[#allocation15_spill] sm:$0xff] %v3119_v35  ;;  %3922 = vst [vmem:[#allocation16_spill] sm:$0xff] %v3122_v54  ;;  %v3135_v49 = vpop.f32.mrb[22].mxu1  ;;  %v3137_v63 = vpop.f32.mrb[23].mxu0  ;;  %v1247_v55 = vmul.f32 %v2448_v23, %v3057_v11  ;;  %v1339_v37 = vmul.f32 %v2446_v44, %v1243_v39  ;;  %2455 = vrcp.f32 %v1282_v60  ;;  %v1070_v36 = vrot.slane %v1069_v50, 4 }
 0x107   :  { %3924 = vst [vmem:[#allocation18_spill] sm:$0xff] %v3129_v22  ;;  %3925 = vst [vmem:[#allocation19_spill] sm:$0xff] %v3132_v20  ;;  %v2450_v10 = vpop.eup %2449  ;;  %v3142_v3 = vpop.f32.mrb[23].mxu1  ;;  %2457 = vrcp.f32 %v1286_v18  ;;  %v3150_v11 = vadd.f32 %v1046_v15, %v1045_v30  ;;  %v949_v30 = vmul.f32 %v3035_v33, %v3035_v33  ;;  %v942_v15 = vmul.f32 %v3047_v46, %v3047_v46 }
 0x108   :  { %3926 = vst [vmem:[#allocation20_spill] sm:$0xff] %v3137_v63  ;;  %3927 = vst [vmem:[#allocation21_spill] sm:$0xff] %v3142_v3  ;;  %v1343_v56 = vmul.f32 %v2450_v10, %v1247_v55  ;;  %v3145_v2 = vmul.f32 %v1339_v37, %v2955_v4  ;;  %v3148_v42 = vmul.f32 %v1339_v37, %v2971_v16 }
 0x109   :  { %v1071_v44 = vadd.f32 %v1070_v36, %v1069_v50  ;;  %v3158_v23 = vpop.f32.mrb[24].mxu0  ;;  %2459 = vrsqrt.f32 %v3150_v11  ;;  %v1281_v4 = vadd.f32 1.0, %v3150_v11  ;;  %v951_v16 = vmul.f32 %v3027_v28, %v3027_v28  ;;  %v3166_v39 = vpop.f32.mrb[24].mxu1 }
 0x10a   :  { %3928 = vst [vmem:[#allocation22_spill] sm:$0xff] %v3145_v2  ;;  %3929 = vst [vmem:[#allocation23_spill] sm:$0xff] %v3148_v42  ;;  %v3153_v40 = vmul.f32 %v1343_v56, %v2961_v9  ;;  %v3156_v25 = vmul.f32 %v1343_v56, %v2977_v21  ;;  %v3168_v9 = vpop.f32.mrb[25].mxu0  ;;  %v943_v21 = vmul.f32 %v3018_v24, %v3018_v24  ;;  %v3176_v60 = vpop.f32.mrb[25].mxu1 }
 0x10b   :  { %3932 = vst [vmem:[#allocation26_spill] sm:$0xff] %v3158_v23  ;;  %3933 = vst [vmem:[#allocation27_spill] sm:$0xff] %v3166_v39  ;;  %v1072_v10 = vrot.slane %v1071_v44, 2  ;;  %v941_v50 = vmul.f32 %v3029_v29, %v3029_v29  ;;  %v944_v55 = vmul.f32 %v3037_v34, %v3037_v34  ;;  %v3178_v18 = vpop.f32.mrb[26].mxu0  ;;  %2461 = vrcp.f32 %v1281_v4  ;;  %v3186_v36 = vpop.f32.mrb[26].mxu1 }
 0x10c   :  { %3930 = vst [vmem:[#allocation24_spill] sm:$0xff] %v3153_v40  ;;  %3931 = vst [vmem:[#allocation25_spill] sm:$0xff] %v3156_v25  ;;  %v952_v37 = vmul.f32 %v3045_v43, %v3045_v43  ;;  %v950_v56 = vmul.f32 %v3051_v59, %v3051_v59  ;;  %v3190_v25 = vpop.f32.mrb[27].mxu1 }
 0x10d   :  { %3934 = vst [vmem:[#allocation28_spill] sm:$0xff] %v3168_v9  ;;  %3935 = vst [vmem:[#allocation29_spill] sm:$0xff] %v3176_v60  ;;  %v3188_v9 = vpop.f32.mrb[27].mxu0  ;;  %v1073_v39 = vadd.f32 %v1072_v10, %v1071_v44  ;;  %v1062_v23 = vadd.f32 %v944_v55, %v943_v21  ;;  %v2452_v60 = vpop.eup %2451  ;;  %v1055_v4 = vadd.f32 %v942_v15, %v941_v50 }
 0x10e   :  { %3936 = vst [vmem:[#allocation30_spill] sm:$0xff] %v3178_v18  ;;  %3937 = vst [vmem:[#allocation31_spill] sm:$0xff] %v3186_v36  ;;  %v1090_v18 = vadd.f32 %v952_v37, %v951_v16  ;;  %v1083_v42 = vadd.f32 %v950_v56, %v949_v30  ;;  %v2454_v40 = vpop.eup %2453  ;;  %v1250_v2 = vmul.f32 %v2452_v60, %v1054_v14 }
 0x10f   :  { %3938 = vst [vmem:[#allocation32_spill] sm:$0xff] %v3188_v9  ;;  %v1074_v20 = vrot.slane %v1073_v39, 1  ;;  %v1063_v54 = vrot.slane %v1062_v23, 4  ;;  %v1254_v3 = vmul.f32 %v2454_v40, %v3112_v53  ;;  %v1056_v22 = vrot.slane %v1055_v4, 4 }
 0x110   :  { %v1091_v27 = vrot.slane %v1090_v18, 4  ;;  %v1084_v35 = vrot.slane %v1083_v42, 4  ;;  %v2456_v36 = vpop.eup %2455  ;;  %v955_v44 = vmul.f32 %v3062_v32, %v3062_v32  ;;  %v956_v16 = vmul.f32 %v3078_v5, %v3078_v5 }
 0x111   :  { %v1075_v63 = vadd.f32 %v1074_v20, %v1073_v39  ;;  %v1064_v9 = vadd.f32 %v1063_v54, %v1062_v23  ;;  %v3197_v10 = vpop.f32.mrb[28].mxu0  ;;  %v2458_v30 = vpop.eup %2457  ;;  %v1346_v14 = vmul.f32 %v2456_v36, %v1250_v2  ;;  %v1057_v50 = vadd.f32 %v1056_v22, %v1055_v4 }
 0x112   :  { %3939 = vst [vmem:[#allocation33_spill] sm:$0xff] %v3197_v10  ;;  %v1092_v21 = vadd.f32 %v1091_v27, %v1090_v18  ;;  %v1085_v55 = vadd.f32 %v1084_v35, %v1083_v42  ;;  %v3199_v53 = vpop.f32.mrb[28].mxu1  ;;  %v3201_v40 = vpop.f32.mrb[29].mxu0  ;;  %v1350_v60 = vmul.f32 %v2458_v30, %v1254_v3  ;;  %v963_v30 = vmul.f32 %v3065_v47, %v3065_v47 }
 0x113   :  { %3940 = vst [vmem:[#allocation34_spill] sm:$0xff] %v3199_v53  ;;  %3941 = vst [vmem:[#allocation35_spill] sm:$0xff] %v3201_v40  ;;  %2463 = vrsqrt.f32 %v1075_v63  ;;  %v1285_v54 = vadd.f32 1.0, %v1075_v63  ;;  %v1065_v20 = vrot.slane %v1064_v9, 2  ;;  %v3203_v23 = vpop.f32.mrb[29].mxu1  ;;  %v3205_v39 = vpop.f32.mrb[30].mxu0  ;;  %v3208_v15 = vmul.f32 %v2981_v38, %v1346_v14 }
 0x114   :  { %3942 = vst [vmem:[#allocation36_spill] sm:$0xff] %v3203_v23  ;;  %3943 = vst [vmem:[#allocation37_spill] sm:$0xff] %v3205_v39  ;;  %v2460_v37 = vpop.eup %2459  ;;  %v3211_v27 = vmul.f32 %v2995_v58, %v1346_v14  ;;  %v1093_v35 = vrot.slane %v1092_v21, 2  ;;  %v1058_v22 = vrot.slane %v1057_v50, 2  ;;  %v3213_v2 = vpop.f32.mrb[30].mxu1  ;;  %v3218_v3 = vmul.f32 %v2985_v48, %v1350_v60 }
 0x115   :  { %3944 = vst [vmem:[#allocation38_spill] sm:$0xff] %v3208_v15  ;;  %3946 = vst [vmem:[#allocation40_spill] sm:$0xff] %v3213_v2  ;;  %v3215_v42 = vpop.f32.mrb[31].mxu0  ;;  %v3221_v18 = vmul.f32 %v3001_v62, %v1350_v60  ;;  %v1249_v56 = vmul.f32 %v2460_v37, %v3150_v11  ;;  %2465 = vrcp.f32 %v1285_v54  ;;  %v3224_v38 = vpop.f32.mrb[31].mxu1  ;;  %v1066_v58 = vadd.f32 %v1065_v20, %v1064_v9 }
 0x116   :  { %3945 = vst [vmem:[#allocation39_spill] sm:$0xff] %v3211_v27  ;;  %3947 = vst [vmem:[#allocation41_spill] sm:$0xff] %v3215_v42  ;;  %v2462_v36 = vpop.eup %2461  ;;  %v1094_v4 = vadd.f32 %v1093_v35, %v1092_v21  ;;  %v964_v14 = vmul.f32 %v3086_v13, %v3086_v13  ;;  %v1059_v48 = vadd.f32 %v1058_v22, %v1057_v50  ;;  %v1086_v42 = vrot.slane %v1085_v55, 2 }
 0x117   :  { %3948 = vst [vmem:[#allocation42_spill] sm:$0xff] %v3218_v3  ;;  %3949 = vst [vmem:[#allocation43_spill] sm:$0xff] %v3221_v18  ;;  %v1345_v40 = vmul.f32 %v2462_v36, %v1249_v56  ;;  %v1104_v2 = vadd.f32 %v956_v16, %v955_v44  ;;  %v1067_v62 = vrot.slane %v1066_v58, 1  ;;  %v953_v44 = vmul.f32 %v3067_v52, %v3067_v52 }
 0x118   :  { %3950 = vst [vmem:[#allocation44_spill] sm:$0xff] %v3224_v38  ;;  %v1095_v60 = vrot.slane %v1094_v4, 1  ;;  %v1060_v9 = vrot.slane %v1059_v48, 1  ;;  %v1087_v21 = vadd.f32 %v1086_v42, %v1085_v55  ;;  %v1132_v38 = vadd.f32 %v964_v14, %v963_v30 }
 0x119   :  { %v3231_v11 = vmul.f32 %v1345_v40, %v2987_v51  ;;  %v3234_v54 = vmul.f32 %v1345_v40, %v3003_v0  ;;  %v1068_v20 = vadd.f32 %v1067_v62, %v1066_v58  ;;  %v1105_v35 = vrot.slane %v1104_v2, 4 }
 0x11a   :  { %v1096_v37 = vadd.f32 %v1095_v60, %v1094_v4  ;;  %v3236_v39 = vadd.f32 %v1060_v9, %v1059_v48  ;;  %v1088_v56 = vrot.slane %v1087_v21, 1  ;;  %v961_v16 = vmul.f32 %v3076_v1, %v3076_v1 }
 0x11b   :  { %3951 = vst [vmem:[#allocation45_spill] sm:$0xff] %v3231_v11  ;;  %3952 = vst [vmem:[#allocation46_spill] sm:$0xff] %v3234_v54  ;;  %2467 = vrsqrt.f32 %v1068_v20  ;;  %v1284_v51 = vadd.f32 1.0, %v1068_v20  ;;  %v1106_v0 = vadd.f32 %v1105_v35, %v1104_v2  ;;  %v1133_v42 = vrot.slane %v1132_v38, 4 }
 0x11c   :  { %v1288_v50 = vadd.f32 1.0, %v1096_v37  ;;  %2469 = vrsqrt.f32 %v1096_v37  ;;  %v1283_v55 = vadd.f32 1.0, %v3236_v39  ;;  %v3243_v22 = vadd.f32 %v1088_v56, %v1087_v21 }
 0x11d   :  { %v2464_v40 = vpop.eup %2463  ;;  %2471 = vrcp.f32 %v1284_v51  ;;  %v1107_v58 = vrot.slane %v1106_v0, 2  ;;  %v954_v4 = vmul.f32 %v3088_v45, %v3088_v45  ;;  %v1134_v48 = vadd.f32 %v1133_v42, %v1132_v38 }
 0x11e   :  { %v1253_v36 = vmul.f32 %v2464_v40, %v1075_v63  ;;  %2473 = vrcp.f32 %v1288_v50  ;;  %v1287_v14 = vadd.f32 1.0, %v3243_v22  ;;  %v962_v2 = vmul.f32 %v3093_v19, %v3093_v19 }
 0x11f   :  { %v2466_v30 = vpop.eup %2465  ;;  %2475 = vrsqrt.f32 %v3236_v39  ;;  %v1108_v60 = vadd.f32 %v1107_v58, %v1106_v0  ;;  %v1097_v9 = vadd.f32 %v954_v4, %v953_v44  ;;  %v1135_v63 = vrot.slane %v1134_v48, 2 }
 0x120   :  { %v1349_v62 = vmul.f32 %v2466_v30, %v1253_v36  ;;  %2477 = vrcp.f32 %v1283_v55  ;;  %v1125_v21 = vadd.f32 %v962_v2, %v961_v16  ;;  %v959_v16 = vmul.f32 %v3110_v12, %v3110_v12 }
 0x121   :  { %2479 = vrsqrt.f32 %v3243_v22  ;;  %v1109_v38 = vrot.slane %v1108_v60, 1  ;;  %v1136_v51 = vadd.f32 %v1135_v63, %v1134_v48  ;;  %v1098_v50 = vrot.slane %v1097_v9, 4 }
 0x122   :  { %v3252_v35 = vmul.f32 %v1349_v62, %v2993_v57  ;;  %v3255_v56 = vmul.f32 %v1349_v62, %v3008_v6  ;;  %2481 = vrcp.f32 %v1287_v14  ;;  %v1126_v40 = vrot.slane %v1125_v21, 4 }
 0x123   :  { %v1110_v42 = vadd.f32 %v1109_v38, %v1108_v60  ;;  %v1137_v36 = vrot.slane %v1136_v51, 1  ;;  %v1099_v0 = vadd.f32 %v1098_v50, %v1097_v9  ;;  %v967_v6 = vmul.f32 %v3114_v17, %v3114_v17 }
 0x124   :  { %3953 = vst [vmem:[#allocation47_spill] sm:$0xff] %v3252_v35  ;;  %3954 = vst [vmem:[#allocation48_spill] sm:$0xff] %v3255_v56  ;;  %v1127_v44 = vadd.f32 %v1126_v40, %v1125_v21  ;;  %v960_v58 = vmul.f32 %v3126_v7, %v3126_v7  ;;  %v968_v63 = vmul.f32 %v3135_v49, %v3135_v49 }
 0x125   :  { %v2468_v55 = vpop.eup %2467  ;;  %2483 = vrsqrt.f32 %v1110_v42  ;;  %v1290_v57 = vadd.f32 1.0, %v1110_v42  ;;  %v1138_v14 = vadd.f32 %v1137_v36, %v1136_v51  ;;  %v1100_v48 = vrot.slane %v1099_v0, 2 }
 0x126   :  { %v2470_v4 = vpop.eup %2469  ;;  %v1252_v30 = vmul.f32 %v2468_v55, %v1068_v20  ;;  %v1128_v2 = vrot.slane %v1127_v44, 2  ;;  %v1118_v9 = vadd.f32 %v960_v58, %v959_v16  ;;  %v1146_v20 = vadd.f32 %v968_v63, %v967_v6 }
 0x127   :  { %v2472_v62 = vpop.eup %2471  ;;  %v1256_v60 = vmul.f32 %v2470_v4, %v1096_v37  ;;  %2485 = vrcp.f32 %v1290_v57  ;;  %v1294_v50 = vadd.f32 1.0, %v1138_v14  ;;  %v1101_v40 = vadd.f32 %v1100_v48, %v1099_v0  ;;  %v3958_v4 = vld [vmem:[#allocation6_spill] sm:$0xff] }
 0x128   :  { %v2474_v21 = vpop.eup %2473  ;;  %v1348_v38 = vmul.f32 %v2472_v62, %v1252_v30  ;;  %2487 = vrsqrt.f32 %v1138_v14  ;;  %v1129_v10 = vadd.f32 %v1128_v2, %v1127_v44  ;;  %v1119_v17 = vrot.slane %v1118_v9, 4  ;;  %v3959_v30 = vld [vmem:[#allocation8_spill] sm:$0xff]  ;;  %v3960_v2 = vld [vmem:[#allocation7_spill] sm:$0xff]  ;;  %v3961_v62 = vld [vmem:[#allocation9_spill] sm:$0xff] }
 0x129   :  { %v2476_v23 = vpop.eup %2475  ;;  %v1352_v53 = vmul.f32 %v2474_v21, %v1256_v60  ;;  %2489 = vrcp.f32 %v1294_v50  ;;  %v1102_v44 = vrot.slane %v1101_v40, 1  ;;  %v1147_v21 = vrot.slane %v1146_v20, 4 }
 0x12a   :  { %v2478_v51 = vpop.eup %2477  ;;  %v3267_v36 = vmul.f32 %v3018_v24, %v1348_v38  ;;  %v3270_v37 = vmul.f32 %v3037_v34, %v1348_v38  ;;  %v1251_v16 = vmul.f32 %v2476_v23, %v3236_v39  ;;  %v1130_v58 = vrot.slane %v1129_v10, 1 }
 0x12b   :  { %v2480_v55 = vpop.eup %2479  ;;  %v3274_v57 = vmul.f32 %v3027_v28, %v1352_v53  ;;  %v3277_v0 = vmul.f32 %v3045_v43, %v1352_v53  ;;  %v1511_v24 = vadd.f32 %v3959_v30, %v3958_v4  ;;  %v1518_v23 = vadd.f32 %v3961_v62, %v3960_v2 }
 0x12c   :  { %3955 = vst [vmem:[#allocation49_spill] sm:$0xff] %v3267_v36  ;;  %v2482_v6 = vpop.eup %2481  ;;  %v1347_v48 = vmul.f32 %v2478_v51, %v1251_v16  ;;  %v1255_v34 = vmul.f32 %v2480_v55, %v3243_v22  ;;  %v1103_v39 = vadd.f32 %v1102_v44, %v1101_v40  ;;  %v1131_v60 = vadd.f32 %v1130_v58, %v1129_v10 }
 0x12d   :  { %3956 = vst [vmem:[#allocation50_spill] sm:$0xff] %v3274_v57  ;;  %3957 = vst [vmem:[#allocation51_spill] sm:$0xff] %v3277_v0  ;;  %v1120_v63 = vadd.f32 %v1119_v17, %v1118_v9  ;;  %v3286_v28 = vadd.f32 %v3104_v26, %v3096_v8  ;;  %v3296_v10 = vadd.f32 %v3107_v31, %v3099_v61  ;;  %v3969_v26 = vld [vmem:[#allocation17_spill] sm:$0xff] }
 0x12e   :  { %v3289_v43 = vmul.f32 %v1347_v48, %v3029_v29  ;;  %v3292_v53 = vmul.f32 %v1347_v48, %v3047_v46  ;;  %v1351_v50 = vmul.f32 %v2482_v6, %v1255_v34  ;;  %2491 = vrsqrt.f32 %v1103_v39  ;;  %v3966_v6 = vld [vmem:[#allocation20_spill] sm:$0xff]  ;;  %v3967_v48 = vld [vmem:[#allocation15_spill] sm:$0xff]  ;;  %v3968_v34 = vld [vmem:[#allocation18_spill] sm:$0xff] }
 0x12f   :  { %v2484_v38 = vpop.eup %2483  ;;  %v1289_v22 = vadd.f32 1.0, %v1103_v39  ;;  %v1293_v51 = vadd.f32 1.0, %v1131_v60  ;;  %2493 = vrsqrt.f32 %v1131_v60  ;;  %v957_v9 = vmul.f32 %v3116_v41, %v3116_v41 }
 0x130   :  { %3962 = vst [vmem:[#allocation52_spill] sm:$0xff] %v3289_v43  ;;  %3963 = vst [vmem:[#allocation53_spill] sm:$0xff] %v3292_v53  ;;  %v1258_v17 = vmul.f32 %v2484_v38, %v1110_v42  ;;  %v3301_v40 = vmul.f32 %v1351_v50, %v3035_v33  ;;  %v3304_v46 = vmul.f32 %v1351_v50, %v3051_v59  ;;  %v1121_v16 = vrot.slane %v1120_v63, 2 }
 0x131   :  { %v2486_v29 = vpop.eup %2485  ;;  %2495 = vrcp.f32 %v1289_v22  ;;  %v1148_v58 = vadd.f32 %v1147_v21, %v1146_v20  ;;  %v958_v42 = vmul.f32 %v3966_v6, %v3966_v6  ;;  %v3310_v38 = vadd.f32 %v3968_v34, %v3967_v48  ;;  %v3972_v34 = vld [vmem:[#allocation21_spill] sm:$0xff]  ;;  %v3974_v48 = vld [vmem:[#allocation19_spill] sm:$0xff] }
 0x132   :  { %3964 = vst [vmem:[#allocation54_spill] sm:$0xff] %v3301_v40  ;;  %3965 = vst [vmem:[#allocation55_spill] sm:$0xff] %v3304_v46  ;;  %v2488_v55 = vpop.eup %2487  ;;  %v1354_v44 = vmul.f32 %v2486_v29, %v1258_v17  ;;  %2497 = vrcp.f32 %v1293_v51  ;;  %v965_v33 = vmul.f32 %v3969_v26, %v3969_v26  ;;  %v1122_v61 = vadd.f32 %v1121_v16, %v1120_v63  ;;  %v3975_v63 = vld [vmem:[#allocation22_spill] sm:$0xff]  ;;  %v3976_v16 = vld [vmem:[#allocation24_spill] sm:$0xff] }
 0x133   :  { %v1262_v31 = vmul.f32 %v2488_v55, %v1138_v14  ;;  %v2490_v59 = vpop.eup %2489  ;;  %v1149_v20 = vrot.slane %v1148_v58, 2  ;;  %v1111_v21 = vadd.f32 %v958_v42, %v957_v9  ;;  %v1512_v51 = vadd.f32 %v1511_v24, %v3208_v15  ;;  %v3973_v55 = vld [vmem:[#allocation16_spill] sm:$0xff]  ;;  %v3978_v42 = vld [vmem:[#allocation23_spill] sm:$0xff] }
 0x134   :  { %v3315_v50 = vmul.f32 %v3062_v32, %v1354_v44  ;;  %v3318_v22 = vmul.f32 %v3078_v5, %v1354_v44  ;;  %v1123_v29 = vrot.slane %v1122_v61, 1  ;;  %v966_v14 = vmul.f32 %v3972_v34, %v3972_v34 }
 0x135   :  { %v1358_v17 = vmul.f32 %v2490_v59, %v1262_v31  ;;  %v3325_v8 = vadd.f32 %v3974_v48, %v3973_v55  ;;  %v3329_v32 = vadd.f32 %v3976_v16, %v3975_v63  ;;  %v1150_v62 = vadd.f32 %v1149_v20, %v1148_v58  ;;  %v3979_v59 = vld [vmem:[#allocation25_spill] sm:$0xff]  ;;  %v3981_v20 = vld [vmem:[#allocation26_spill] sm:$0xff] }
 0x136   :  { %3970 = vst [vmem:[#allocation20_spill] sm:$0xff] %v3315_v50  ;;  %3971 = vst [vmem:[#allocation17_spill] sm:$0xff] %v3318_v22  ;;  %v1112_v5 = vrot.slane %v1111_v21, 4  ;;  %v1124_v31 = vadd.f32 %v1123_v29, %v1122_v61  ;;  %v1139_v9 = vadd.f32 %v966_v14, %v965_v33  ;;  %v3339_v15 = vadd.f32 %v3979_v59, %v3978_v42 }
 0x137   :  { %3977 = vst [vmem:[#allocation21_spill] sm:$0xff] %v3329_v32  ;;  %v3332_v44 = vmul.f32 %v3065_v47, %v1358_v17  ;;  %v3335_v24 = vmul.f32 %v3086_v13, %v1358_v17  ;;  %v1519_v48 = vadd.f32 %v1518_v23, %v3211_v27  ;;  %v1151_v55 = vrot.slane %v1150_v62, 1  ;;  %v3982_v23 = vld [vmem:[#allocation27_spill] sm:$0xff] }
 0x138   :  { %3980 = vst [vmem:[#allocation56_spill] sm:$0xff] %v3339_v15  ;;  %v1113_v30 = vadd.f32 %v1112_v5, %v1111_v21  ;;  %v2492_v16 = vpop.eup %2491  ;;  %v3343_v58 = vadd.f32 %v1512_v51, %v3218_v3  ;;  %2499 = vrsqrt.f32 %v1124_v31  ;;  %v1292_v47 = vadd.f32 1.0, %v1124_v31  ;;  %v3983_v5 = vld [vmem:[#allocation30_spill] sm:$0xff] }
 0x139   :  { %v971_v13 = vmul.f32 %v3981_v20, %v3981_v20  ;;  %v2494_v17 = vpop.eup %2493  ;;  %v1257_v61 = vmul.f32 %v2492_v16, %v1103_v39  ;;  %v1152_v33 = vadd.f32 %v1151_v55, %v1150_v62  ;;  %v1140_v14 = vrot.slane %v1139_v9, 4  ;;  %v3984_v62 = vld [vmem:[#allocation31_spill] sm:$0xff] }
 0x13a   :  { %v1114_v29 = vrot.slane %v1113_v30, 2  ;;  %v1261_v42 = vmul.f32 %v2494_v17, %v1131_v60  ;;  %2501 = vrcp.f32 %v1292_v47  ;;  %v979_v21 = vmul.f32 %v3982_v23, %v3982_v23 }
 0x13b   :  { %v2496_v59 = vpop.eup %2495  ;;  %v972_v51 = vmul.f32 %v3983_v5, %v3983_v5  ;;  %2503 = vrsqrt.f32 %v1152_v33  ;;  %v1296_v27 = vadd.f32 1.0, %v1152_v33  ;;  %v1141_v46 = vadd.f32 %v1140_v14, %v1139_v9 }
 0x13c   :  { %v2498_v63 = vpop.eup %2497  ;;  %v1353_v3 = vmul.f32 %v2496_v59, %v1257_v61  ;;  %v1115_v2 = vadd.f32 %v1114_v29, %v1113_v30  ;;  %v980_v55 = vmul.f32 %v3984_v62, %v3984_v62  ;;  %v3986_v61 = vld [vmem:[#allocation29_spill] sm:$0xff] }
 0x13d   :  { %v1357_v4 = vmul.f32 %v2498_v63, %v1261_v42  ;;  %v1160_v39 = vadd.f32 %v972_v51, %v971_v13  ;;  %2505 = vrcp.f32 %v1296_v27  ;;  %v1142_v30 = vrot.slane %v1141_v46, 2  ;;  %v3985_v42 = vld [vmem:[#allocation28_spill] sm:$0xff] }
 0x13e   :  { %v3354_v60 = vmul.f32 %v1353_v3, %v3067_v52  ;;  %v3357_v16 = vmul.f32 %v1353_v3, %v3088_v45  ;;  %v1116_v47 = vrot.slane %v1115_v2, 1  ;;  %v969_v13 = vmul.f32 %v3985_v42, %v3985_v42  ;;  %v3987_v27 = vld [vmem:[#allocation32_spill] sm:$0xff] }
 0x13f   :  { %v3360_v17 = vmul.f32 %v1357_v4, %v3076_v1  ;;  %v3363_v59 = vmul.f32 %v1357_v4, %v3093_v19  ;;  %v1161_v63 = vrot.slane %v1160_v39, 4  ;;  %v977_v52 = vmul.f32 %v3986_v61, %v3986_v61 }
 0x140   :  { %v1117_v9 = vadd.f32 %v1116_v47, %v1115_v2  ;;  %v1188_v29 = vadd.f32 %v980_v55, %v979_v21  ;;  %v1143_v45 = vadd.f32 %v1142_v30, %v1141_v46  ;;  %v970_v14 = vmul.f32 %v3987_v27, %v3987_v27 }
 0x141   :  { %v1162_v3 = vadd.f32 %v1161_v63, %v1160_v39  ;;  %v978_v1 = vmul.f32 %v3190_v25, %v3190_v25  ;;  %v1498_v19 = vadd.f32 %v3286_v28, %v3231_v11  ;;  %v1505_v4 = vadd.f32 %v3296_v10, %v3234_v54 }
 0x142   :  { %2507 = vrsqrt.f32 %v1117_v9  ;;  %v1291_v2 = vadd.f32 1.0, %v1117_v9  ;;  %v2500_v51 = vpop.eup %2499  ;;  %v1144_v47 = vrot.slane %v1143_v45, 1  ;;  %v1189_v21 = vrot.slane %v1188_v29, 4 }
 0x143   :  { %v1163_v40 = vrot.slane %v1162_v3, 2  ;;  %v1153_v46 = vadd.f32 %v970_v14, %v969_v13  ;;  %v3378_v39 = vadd.f32 %v1519_v48, %v3221_v18  ;;  %v1260_v55 = vmul.f32 %v2500_v51, %v1124_v31 }
 0x144   :  { %2509 = vrcp.f32 %v1291_v2  ;;  %v1181_v30 = vadd.f32 %v978_v1, %v977_v52  ;;  %v2502_v63 = vpop.eup %2501  ;;  %v1145_v15 = vadd.f32 %v1144_v47, %v1143_v45  ;;  %v1190_v28 = vadd.f32 %v1189_v21, %v1188_v29 }
 0x145   :  { %v1164_v53 = vadd.f32 %v1163_v40, %v1162_v3  ;;  %v1154_v11 = vrot.slane %v1153_v46, 4  ;;  %v2504_v32 = vpop.eup %2503  ;;  %v3381_v10 = vadd.f32 %v1498_v19, %v3252_v35  ;;  %v3384_v54 = vadd.f32 %v1505_v4, %v3255_v56 }
 0x146   :  { %v1356_v43 = vmul.f32 %v2502_v63, %v1260_v55  ;;  %v1182_v13 = vrot.slane %v1181_v30, 4  ;;  %v1264_v14 = vmul.f32 %v2504_v32, %v1152_v33  ;;  %2511 = vrsqrt.f32 %v1145_v15  ;;  %v3993_v55 = vld [vmem:[#allocation33_spill] sm:$0xff] }
 0x147   :  { %v1295_v48 = vadd.f32 1.0, %v1145_v15  ;;  %v1165_v31 = vrot.slane %v1164_v53, 1  ;;  %v2506_v2 = vpop.eup %2505  ;;  %v1191_v29 = vrot.slane %v1190_v28, 2  ;;  %v1155_v45 = vadd.f32 %v1154_v11, %v1153_v46 }
 0x148   :  { %v3387_v52 = vmul.f32 %v3110_v12, %v1356_v43  ;;  %v3390_v40 = vmul.f32 %v3126_v7, %v1356_v43  ;;  %v1360_v3 = vmul.f32 %v2506_v2, %v1264_v14  ;;  %v1183_v19 = vadd.f32 %v1182_v13, %v1181_v30  ;;  %v3990_v12 = vld [vmem:[#allocation14_spill] sm:$0xff]  ;;  %v3996_v2 = vld [vmem:[#allocation37_spill] sm:$0xff] }
 0x149   :  { %2513 = vrcp.f32 %v1295_v48  ;;  %v1166_v1 = vadd.f32 %v1165_v31, %v1164_v53  ;;  %v3394_v4 = vadd.f32 %v3310_v38, %v3267_v36  ;;  %v1514_v32 = vadd.f32 %v3343_v58, %v3315_v50  ;;  %v3994_v58 = vld [vmem:[#allocation34_spill] sm:$0xff] }
 0x14a   :  { %3988 = vst [vmem:[#allocation26_spill] sm:$0xff] %v3387_v52  ;;  %3989 = vst [vmem:[#allocation27_spill] sm:$0xff] %v3390_v40  ;;  %v1192_v33 = vadd.f32 %v1191_v29, %v1190_v28  ;;  %v1156_v51 = vrot.slane %v1155_v45, 2  ;;  %v3399_v47 = vmul.f32 %v3990_v12, %v1360_v3  ;;  %v3402_v7 = vmul.f32 %v3135_v49, %v1360_v3  ;;  %v3995_v28 = vld [vmem:[#allocation36_spill] sm:$0xff]  ;;  %v3998_v12 = vld [vmem:[#allocation41_spill] sm:$0xff] }
 0x14b   :  { %2515 = vrsqrt.f32 %v1166_v1  ;;  %v1298_v11 = vadd.f32 1.0, %v1166_v1  ;;  %v1184_v46 = vrot.slane %v1183_v19, 2  ;;  %v975_v38 = vmul.f32 %v3993_v55, %v3993_v55  ;;  %v3997_v3 = vld [vmem:[#allocation40_spill] sm:$0xff] }
 0x14c   :  { %3991 = vst [vmem:[#allocation30_spill] sm:$0xff] %v3399_v47  ;;  %3992 = vst [vmem:[#allocation31_spill] sm:$0xff] %v3402_v7  ;;  %v2508_v43 = vpop.eup %2507  ;;  %v1193_v53 = vrot.slane %v1192_v33, 1  ;;  %v1157_v21 = vadd.f32 %v1156_v51, %v1155_v45  ;;  %v983_v63 = vmul.f32 %v3994_v58, %v3994_v58  ;;  %v981_v13 = vmul.f32 %v3995_v28, %v3995_v28 }
 0x14d   :  { %v1259_v30 = vmul.f32 %v2508_v43, %v1117_v9  ;;  %2517 = vrcp.f32 %v1298_v11  ;;  %v1185_v31 = vadd.f32 %v1184_v46, %v1183_v19  ;;  %v976_v29 = vmul.f32 %v3996_v2, %v3996_v2  ;;  %v3999_v11 = vld [vmem:[#allocation44_spill] sm:$0xff] }
 0x14e   :  { %v2510_v14 = vpop.eup %2509  ;;  %v1194_v49 = vadd.f32 %v1193_v53, %v1192_v33  ;;  %v1158_v48 = vrot.slane %v1157_v21, 1  ;;  %v984_v51 = vmul.f32 %v3997_v3, %v3997_v3  ;;  %v974_v9 = vmul.f32 %v3998_v12, %v3998_v12 }
 0x14f   :  { %v1355_v45 = vmul.f32 %v2510_v14, %v1259_v30  ;;  %v982_v43 = vmul.f32 %v3999_v11, %v3999_v11  ;;  %v1186_v33 = vrot.slane %v1185_v31, 1  ;;  %v1174_v30 = vadd.f32 %v976_v29, %v975_v38 }
 0x150   :  { %2519 = vrsqrt.f32 %v1194_v49  ;;  %v1302_v36 = vadd.f32 1.0, %v1194_v49  ;;  %v3418_v56 = vadd.f32 %v1158_v48, %v1157_v21  ;;  %v2512_v53 = vpop.eup %2511  ;;  %v1202_v14 = vadd.f32 %v984_v51, %v983_v63  ;;  %v4002_v48 = vld [vmem:[#allocation35_spill] sm:$0xff] }
 0x151   :  { %v3421_v19 = vmul.f32 %v1355_v45, %v3116_v41  ;;  %v3424_v46 = vmul.f32 %v1355_v45, %v3966_v6  ;;  %v1263_v35 = vmul.f32 %v2512_v53, %v1145_v15  ;;  %v3427_v18 = vadd.f32 %v1186_v33, %v1185_v31 }
 0x152   :  { %2521 = vrcp.f32 %v1302_v36  ;;  %v1297_v50 = vadd.f32 1.0, %v3418_v56  ;;  %v1521_v21 = vadd.f32 %v3378_v39, %v3318_v22  ;;  %v973_v41 = vmul.f32 %v4002_v48, %v4002_v48 }
 0x153   :  { %4000 = vst [vmem:[#allocation28_spill] sm:$0xff] %v3421_v19  ;;  %4001 = vst [vmem:[#allocation29_spill] sm:$0xff] %v3424_v46  ;;  %v2514_v11 = vpop.eup %2513  ;;  %2523 = vrsqrt.f32 %v3418_v56  ;;  %v1175_v28 = vrot.slane %v1174_v30, 4  ;;  %v1301_v38 = vadd.f32 1.0, %v3427_v18  ;;  %v1203_v15 = vrot.slane %v1202_v14, 4 }
 0x154   :  { %v1359_v6 = vmul.f32 %v2514_v11, %v1263_v35  ;;  %2525 = vrcp.f32 %v1297_v50  ;;  %v1167_v31 = vadd.f32 %v974_v9, %v973_v41  ;;  %v1195_v29 = vadd.f32 %v982_v43, %v981_v13 }
 0x155   :  { %v2516_v36 = vpop.eup %2515  ;;  %2527 = vrsqrt.f32 %v3427_v18  ;;  %v1176_v63 = vadd.f32 %v1175_v28, %v1174_v30  ;;  %v1204_v50 = vadd.f32 %v1203_v15, %v1202_v14  ;;  %v3444_v22 = vadd.f32 %v3325_v8, %v3270_v37 }
 0x156   :  { %v3437_v45 = vmul.f32 %v1359_v6, %v3969_v26  ;;  %v3440_v39 = vmul.f32 %v1359_v6, %v3972_v34  ;;  %v1266_v51 = vmul.f32 %v2516_v36, %v1166_v1  ;;  %2529 = vrcp.f32 %v1301_v38 }
 0x157   :  { %v2518_v33 = vpop.eup %2517  ;;  %v1177_v35 = vrot.slane %v1176_v63, 2  ;;  %v1168_v11 = vrot.slane %v1167_v31, 4  ;;  %v1196_v53 = vrot.slane %v1195_v29, 4  ;;  %v1515_v28 = vadd.f32 %v1514_v32, %v3332_v44 }
 0x158   :  { %4003 = vst [vmem:[#allocation32_spill] sm:$0xff] %v3437_v45  ;;  %4004 = vst [vmem:[#allocation14_spill] sm:$0xff] %v3440_v39  ;;  %v1522_v13 = vadd.f32 %v1521_v21, %v3335_v24  ;;  %v1362_v26 = vmul.f32 %v2518_v33, %v1266_v51  ;;  %v1205_v43 = vrot.slane %v1204_v50, 2  ;;  %v1500_v41 = vadd.f32 %v3381_v10, %v3354_v60 }
 0x159   :  { %v1178_v9 = vadd.f32 %v1177_v35, %v1176_v63  ;;  %v1169_v34 = vadd.f32 %v1168_v11, %v1167_v31  ;;  %v1197_v30 = vadd.f32 %v1196_v53, %v1195_v29  ;;  %v1507_v14 = vadd.f32 %v3384_v54, %v3357_v16 }
 0x15a   :  { %v2520_v1 = vpop.eup %2519  ;;  %v3453_v6 = vmul.f32 %v3981_v20, %v1362_v26  ;;  %v3456_v8 = vmul.f32 %v3983_v5, %v1362_v26  ;;  %v1206_v38 = vadd.f32 %v1205_v43, %v1204_v50  ;;  %v1541_v63 = vadd.f32 %v3394_v4, %v3274_v57 }
 0x15b   :  { %v1270_v32 = vmul.f32 %v2520_v1, %v1194_v49  ;;  %v1179_v21 = vrot.slane %v1178_v9, 1  ;;  %v1170_v15 = vrot.slane %v1169_v34, 2  ;;  %v1198_v29 = vrot.slane %v1197_v30, 2 }
 0x15c   :  { %v2522_v36 = vpop.eup %2521  ;;  %v1516_v31 = vadd.f32 %v1515_v28, %v3453_v6  ;;  %v1523_v10 = vadd.f32 %v1522_v13, %v3456_v8  ;;  %v1207_v33 = vrot.slane %v1206_v38, 1  ;;  %v1501_v49 = vadd.f32 %v1500_v41, %v3360_v17 }
 0x15d   :  { %v2524_v54 = vpop.eup %2523  ;;  %v1366_v51 = vmul.f32 %v2522_v36, %v1270_v32  ;;  %v1180_v20 = vadd.f32 %v1179_v21, %v1178_v9  ;;  %v1171_v35 = vadd.f32 %v1170_v15, %v1169_v34  ;;  %v1508_v50 = vadd.f32 %v1507_v14, %v3363_v59 }
 0x15e   :  { %v2526_v5 = vpop.eup %2525  ;;  %v1265_v11 = vmul.f32 %v2524_v54, %v3418_v56  ;;  %v1199_v53 = vadd.f32 %v1198_v29, %v1197_v30  ;;  %v1208_v1 = vadd.f32 %v1207_v33, %v1206_v38 }
 0x15f   :  { %v2528_v26 = vpop.eup %2527  ;;  %v3466_v4 = vmul.f32 %v3982_v23, %v1366_v51  ;;  %v3469_v28 = vmul.f32 %v3984_v62, %v1366_v51  ;;  %2531 = vrsqrt.f32 %v1180_v20  ;;  %v1300_v13 = vadd.f32 1.0, %v1180_v20 }
 0x160   :  { %v2530_v9 = vpop.eup %2529  ;;  %v1361_v43 = vmul.f32 %v2526_v5, %v1265_v11  ;;  %v1269_v34 = vmul.f32 %v2528_v26, %v3427_v18  ;;  %v1172_v41 = vrot.slane %v1171_v35, 1  ;;  %v1200_v30 = vrot.slane %v1199_v53, 1  ;;  %v4005_v5 = vld [vmem:[#allocation52_spill] sm:$0xff] }
 0x161   :  { %v1517_v14 = vadd.f32 %v1516_v31, %v3466_v4  ;;  %v1524_v56 = vadd.f32 %v1523_v10, %v3469_v28  ;;  %2533 = vrcp.f32 %v1300_v13  ;;  %v1304_v18 = vadd.f32 1.0, %v1208_v1 }
 0x162   :  { %v3475_v23 = vmul.f32 %v1361_v43, %v3985_v42  ;;  %v3478_v62 = vmul.f32 %v1361_v43, %v3987_v27  ;;  %v1365_v32 = vmul.f32 %v2530_v9, %v1269_v34  ;;  %2535 = vrsqrt.f32 %v1208_v1  ;;  %v4007_v43 = vld [vmem:[#allocation53_spill] sm:$0xff]  ;;  %v4008_v34 = vld [vmem:[#allocation56_spill] sm:$0xff] }
 0x163   :  { %v3480_v21 = vmul.f32 0.125, %v1517_v14  ;;  %v3482_v15 = vmul.f32 0.125, %v1524_v56  ;;  %v1173_v38 = vadd.f32 %v1172_v41, %v1171_v35  ;;  %2537 = vrcp.f32 %v1304_v18 }
 0x164   :  { %v1502_v36 = vadd.f32 %v1501_v49, %v3475_v23  ;;  %v1509_v31 = vadd.f32 %v1508_v50, %v3478_v62  ;;  %v3487_v10 = vmul.f32 %v1365_v32, %v3986_v61  ;;  %v3490_v42 = vmul.f32 %v1365_v32, %v3190_v25  ;;  %v4006_v25 = vld [vmem:[#allocation21_spill] sm:$0xff] }
 0x165   :  { %v1563_v27 = vmul.f32 %v3480_v21, %v3480_v21  ;;  %v1564_v29 = vmul.f32 %v3482_v15, %v3482_v15  ;;  %v1299_v54 = vadd.f32 1.0, %v1173_v38  ;;  %2539 = vrsqrt.f32 %v1173_v38 }
 0x166   :  { %v1503_v51 = vadd.f32 %v1502_v36, %v3487_v10  ;;  %v1510_v33 = vadd.f32 %v1509_v31, %v3490_v42  ;;  %v1201_v35 = vadd.f32 %v1200_v30, %v1199_v53  ;;  %v1548_v61 = vadd.f32 %v3444_v22, %v3277_v0 }
 0x167   :  { %v1526_v49 = vadd.f32 %v4006_v25, %v4005_v5  ;;  %v1576_v50 = vadd.f32 %v1564_v29, %v1563_v27  ;;  %2541 = vrcp.f32 %v1299_v54  ;;  %v1533_v41 = vadd.f32 %v4008_v34, %v4007_v43  ;;  %v4009_v27 = vld [vmem:[#allocation54_spill] sm:$0xff] }
 0x168   :  { %v3502_v11 = vmul.f32 0.125, %v1503_v51  ;;  %v3504_v26 = vmul.f32 0.125, %v1510_v33  ;;  %2543 = vrsqrt.f32 %v1201_v35  ;;  %v1303_v13 = vadd.f32 1.0, %v1201_v35  ;;  %v4010_v33 = vld [vmem:[#allocation55_spill] sm:$0xff] }
 0x169   :  { %v2532_v9 = vpop.eup %2531  ;;  %v1542_v53 = vadd.f32 %v1541_v63, %v3387_v52  ;;  %v1549_v14 = vadd.f32 %v1548_v61, %v3390_v40  ;;  %v1577_v22 = vrot.slane %v1576_v50, 4  ;;  %v1527_v29 = vadd.f32 %v1526_v49, %v4009_v27 }
 0x16a   :  { %v1561_v56 = vmul.f32 %v3502_v11, %v3502_v11  ;;  %v1562_v30 = vmul.f32 %v3504_v26, %v3504_v26  ;;  %v1268_v32 = vmul.f32 %v2532_v9, %v1180_v20  ;;  %2545 = vrcp.f32 %v1303_v13 }
 0x16b   :  { %v2534_v18 = vpop.eup %2533  ;;  %v1578_v36 = vadd.f32 %v1577_v22, %v1576_v50  ;;  %v1534_v63 = vadd.f32 %v1533_v41, %v4010_v33  ;;  %v1543_v61 = vadd.f32 %v1542_v53, %v3399_v47  ;;  %v1550_v43 = vadd.f32 %v1549_v14, %v3402_v7  ;;  %v4031_v33 = vld [vmem:[#allocation20_spill] sm:$0xff] }
 0x16c   :  { %v2536_v31 = vpop.eup %2535  ;;  %v1569_v54 = vadd.f32 %v1562_v30, %v1561_v56  ;;  %v1364_v51 = vmul.f32 %v2534_v18, %v1268_v32  ;;  %v1528_v49 = vadd.f32 %v1527_v29, %v3421_v19 }
 0x16d   :  { %v1579_v25 = vrot.slane %v1578_v36, 2  ;;  %v1272_v34 = vmul.f32 %v2536_v31, %v1208_v1  ;;  %v2538_v50 = vpop.eup %2537  ;;  %v1535_v13 = vadd.f32 %v1534_v63, %v3424_v46 }
 0x16e   :  { %v1570_v5 = vrot.slane %v1569_v54, 4  ;;  %v3519_v40 = vmul.f32 %v3993_v55, %v1364_v51  ;;  %v3522_v20 = vmul.f32 %v3996_v2, %v1364_v51 }
 0x16f   :  { %v1580_v9 = vadd.f32 %v1579_v25, %v1578_v36  ;;  %v2540_v41 = vpop.eup %2539  ;;  %v1368_v14 = vmul.f32 %v2538_v50, %v1272_v34  ;;  %v1529_v36 = vadd.f32 %v1528_v49, %v3437_v45 }
 0x170   :  { %4011 = vst [vmem:[#allocation33_spill] sm:$0xff] %v3519_v40  ;;  %4012 = vst [vmem:[#allocation34_spill] sm:$0xff] %v3522_v20  ;;  %v1571_v22 = vadd.f32 %v1570_v5, %v1569_v54  ;;  %v1544_v53 = vadd.f32 %v1543_v61, %v3519_v40  ;;  %v1551_v1 = vadd.f32 %v1550_v43, %v3522_v20 }
 0x171   :  { %v2542_v56 = vpop.eup %2541  ;;  %v1581_v30 = vrot.slane %v1580_v9, 1  ;;  %v1267_v55 = vmul.f32 %v2540_v41, %v1173_v38  ;;  %v3529_v2 = vmul.f32 %v3994_v58, %v1368_v14  ;;  %v3532_v31 = vmul.f32 %v3997_v3, %v1368_v14 }
 0x172   :  { %v2544_v32 = vpop.eup %2543  ;;  %v1572_v18 = vrot.slane %v1571_v22, 2  ;;  %v1536_v43 = vadd.f32 %v1535_v13, %v3440_v39 }
 0x173   :  { %4013 = vst [vmem:[#allocation37_spill] sm:$0xff] %v3529_v2  ;;  %4014 = vst [vmem:[#allocation40_spill] sm:$0xff] %v3532_v31  ;;  %v1582_v29 = vadd.f32 %v1581_v30, %v1580_v9  ;;  %v1363_v5 = vmul.f32 %v2542_v56, %v1267_v55  ;;  %v1271_v54 = vmul.f32 %v2544_v32, %v1201_v35 }
 0x174   :  { %v2546_v51 = vpop.eup %2545  ;;  %v1573_v63 = vadd.f32 %v1572_v18, %v1571_v22  ;;  %v1545_v61 = vadd.f32 %v1544_v53, %v3529_v2  ;;  %v1552_v38 = vadd.f32 %v1551_v1, %v3532_v31  ;;  %v4019_v1 = vld [vmem:[#allocation44_spill] sm:$0xff] }
 0x175   :  { %2547 = vrsqrt.f32 %v1582_v29  ;;  %v1606_v25 = vadd.f32 1.0, %v1582_v29  ;;  %v3539_v58 = vmul.f32 %v1363_v5, %v4002_v48  ;;  %v3542_v3 = vmul.f32 %v1363_v5, %v3998_v12  ;;  %v4017_v12 = vld [vmem:[#allocation36_spill] sm:$0xff] }
 0x176   :  { %v1574_v34 = vrot.slane %v1573_v63, 1  ;;  %v3544_v50 = vmul.f32 0.125, %v1545_v61  ;;  %v3546_v35 = vmul.f32 0.125, %v1552_v38  ;;  %v1367_v49 = vmul.f32 %v2546_v51, %v1271_v54 }
 0x177   :  { %4015 = vst [vmem:[#allocation41_spill] sm:$0xff] %v3539_v58  ;;  %4016 = vst [vmem:[#allocation35_spill] sm:$0xff] %v3542_v3  ;;  %2549 = vrcp.f32 %v1606_v25  ;;  %v1530_v13 = vadd.f32 %v1529_v36, %v3539_v58  ;;  %v1537_v9 = vadd.f32 %v1536_v43, %v3542_v3 }
 0x178   :  { %v1575_v41 = vadd.f32 %v1574_v34, %v1573_v63  ;;  %v1567_v22 = vmul.f32 %v3544_v50, %v3544_v50  ;;  %v1568_v48 = vmul.f32 %v3546_v35, %v3546_v35  ;;  %v3555_v53 = vmul.f32 %v1367_v49, %v4017_v12 }
 0x179   :  { %v3558_v14 = vmul.f32 %v1367_v49, %v4019_v1 }
 0x17a   :  { %4018 = vst [vmem:[#allocation21_spill] sm:$0xff] %v3555_v53  ;;  %v1590_v56 = vadd.f32 %v1568_v48, %v1567_v22  ;;  %v1531_v30 = vadd.f32 %v1530_v13, %v3555_v53  ;;  %2551 = vrsqrt.f32 %v1575_v41  ;;  %v1605_v5 = vadd.f32 1.0, %v1575_v41  ;;  %v4023_v48 = vld [vmem:[#allocation6_spill] sm:$0xff]  ;;  %v4028_v53 = vld [vmem:[#allocation39_spill] sm:$0xff] }
 0x17b   :  { %4020 = vst [vmem:[#allocation56_spill] sm:$0xff] %v3558_v14  ;;  %v1538_v55 = vadd.f32 %v1537_v9, %v3558_v14 }
 0x17c   :  { %v1591_v32 = vrot.slane %v1590_v56, 4  ;;  %v3562_v18 = vmul.f32 0.125, %v1531_v30  ;;  %2553 = vrcp.f32 %v1605_v5  ;;  %v4029_v5 = vld [vmem:[#allocation42_spill] sm:$0xff] }
 0x17d   :  { %v3564_v36 = vmul.f32 0.125, %v1538_v55  ;;  %v4026_v55 = vld [vmem:[#allocation9_spill] sm:$0xff] }
 0x17e   :  { %4021 = vst [vmem:[#allocation36_spill] sm:$0xff] %v3562_v18  ;;  %v1592_v43 = vadd.f32 %v1591_v32, %v1590_v56  ;;  %v1565_v61 = vmul.f32 %v3562_v18, %v3562_v18  ;;  %v4025_v56 = vld [vmem:[#allocation8_spill] sm:$0xff]  ;;  %v4032_v18 = vld [vmem:[#allocation17_spill] sm:$0xff] }
 0x17f   :  { %4022 = vst [vmem:[#allocation44_spill] sm:$0xff] %v3564_v36  ;;  %v2548_v54 = vpop.eup %2547  ;;  %v1566_v38 = vmul.f32 %v3564_v36, %v3564_v36 }
 0x180   :  { %v1602_v51 = vmul.f32 %v2548_v54, %v1582_v29  ;;  %v1593_v13 = vrot.slane %v1592_v43, 2  ;;  %v4024_v29 = vld [vmem:[#allocation7_spill] sm:$0xff]  ;;  %v4027_v54 = vld [vmem:[#allocation38_spill] sm:$0xff] }
 0x181   :  { %v2550_v63 = vpop.eup %2549  ;;  %v1583_v9 = vadd.f32 %v1566_v38, %v1565_v61  ;;  %v4030_v38 = vld [vmem:[#allocation43_spill] sm:$0xff] }
 0x182   :  { %v1614_v25 = vmul.f32 %v2550_v63, %v1602_v51 }
 0x183   :  { %v1584_v45 = vrot.slane %v1583_v9, 4 }
 0x184   :  { %v1619_v34 = vmul.f32 %v1614_v25, %v3480_v21  ;;  %v1620_v49 = vmul.f32 %v1614_v25, %v3482_v15  ;;  %v2552_v22 = vpop.eup %2551  ;;  %v1594_v25 = vadd.f32 %v1593_v13, %v1592_v43 }
 0x185   :  { %v1601_v39 = vmul.f32 %v2552_v22, %v1575_v41 }
 0x186   :  { %v1635_v12 = vmul.f32 %v1619_v34, %v4023_v48  ;;  %v1636_v1 = vmul.f32 %v1620_v49, %v4024_v29  ;;  %v1692_v30 = vmul.f32 %v1619_v34, %v4025_v56  ;;  %v1693_v32 = vmul.f32 %v1620_v49, %v4026_v55 }
 0x187   :  { %v1749_v14 = vmul.f32 %v1619_v34, %v4027_v54  ;;  %v1750_v51 = vmul.f32 %v1620_v49, %v4028_v53  ;;  %v1806_v63 = vmul.f32 %v1619_v34, %v4029_v5  ;;  %v1807_v58 = vmul.f32 %v1620_v49, %v4030_v38 }
 0x188   :  { %v1645_v21 = vmul.f32 1.442695, %v1635_v12  ;;  %v1647_v3 = vmul.f32 1.442695, %v1636_v1  ;;  %v1702_v15 = vmul.f32 1.442695, %v1692_v30  ;;  %v1863_v27 = vmul.f32 %v1619_v34, %v4031_v33  ;;  %v2554_v12 = vpop.eup %2553 }
 0x189   :  { %v1704_v61 = vmul.f32 1.442695, %v1693_v32  ;;  %v1759_v46 = vmul.f32 1.442695, %v1749_v14  ;;  %v1761_v19 = vmul.f32 1.442695, %v1750_v51  ;;  %v1864_v31 = vmul.f32 %v1620_v49, %v4032_v18 }
 0x18a   :  { %2555 = vpow2.f32 %v1645_v21  ;;  %v1816_v36 = vmul.f32 1.442695, %v1806_v63  ;;  %v1920_v2 = vmul.f32 %v1619_v34, %v3332_v44  ;;  %v1921_v43 = vmul.f32 %v1620_v49, %v3335_v24 }
 0x18b   :  { %2557 = vpow2.f32 %v1647_v3  ;;  %v1977_v13 = vmul.f32 %v1619_v34, %v3453_v6  ;;  %v1978_v41 = vmul.f32 %v1620_v49, %v3456_v8  ;;  %v1818_v22 = vmul.f32 1.442695, %v1807_v58 }
 0x18c   :  { %2559 = vpow2.f32 %v1702_v15  ;;  %v2034_v14 = vmul.f32 %v1619_v34, %v3466_v4  ;;  %v1595_v1 = vrot.slane %v1594_v25, 1  ;;  %v1873_v3 = vmul.f32 1.442695, %v1863_v27  ;;  %v4035_v34 = vld [vmem:[#allocation12_spill] sm:$0xff] }
 0x18d   :  { %2561 = vpow2.f32 %v1704_v61  ;;  %v2035_v30 = vmul.f32 %v1620_v49, %v3469_v28  ;;  %v3588_v32 = vadd.f32 %v1584_v45, %v1583_v9  ;;  %v1875_v51 = vmul.f32 1.442695, %v1864_v31  ;;  %v4034_v31 = vld [vmem:[#allocation11_spill] sm:$0xff] }
 0x18e   :  { %2563 = vpow2.f32 %v1759_v46  ;;  %v1930_v63 = vmul.f32 1.442695, %v1920_v2  ;;  %v1613_v21 = vmul.f32 %v2554_v12, %v1601_v39  ;;  %v1932_v15 = vmul.f32 1.442695, %v1921_v43  ;;  %v4033_v39 = vld [vmem:[#allocation10_spill] sm:$0xff]  ;;  %v4037_v12 = vld [vmem:[#allocation45_spill] sm:$0xff] }
 0x18f   :  { %2565 = vpow2.f32 %v1761_v19  ;;  %v1987_v20 = vmul.f32 1.442695, %v1977_v13  ;;  %v1989_v40 = vmul.f32 1.442695, %v1978_v41  ;;  %v2044_v61 = vmul.f32 1.442695, %v2034_v14 }
 0x190   :  { %2567 = vpow2.f32 %v1816_v36  ;;  %v3591_v58 = vmul.f32 %v1613_v21, %v3502_v11  ;;  %v3594_v46 = vmul.f32 %v1613_v21, %v3504_v26  ;;  %v2046_v27 = vmul.f32 1.442695, %v2035_v30  ;;  %v4036_v26 = vld [vmem:[#allocation13_spill] sm:$0xff]  ;;  %v4038_v43 = vld [vmem:[#allocation46_spill] sm:$0xff] }
 0x191   :  { %2569 = vpow2.f32 %v1818_v22  ;;  %v3596_v45 = vadd.f32 %v1595_v1, %v1594_v25 }
 0x192   :  { %2571 = vpow2.f32 %v1873_v3  ;;  %v1633_v2 = vmul.f32 %v3591_v58, %v4033_v39  ;;  %v1634_v36 = vmul.f32 %v3594_v46, %v4034_v31  ;;  %v1690_v11 = vmul.f32 %v3591_v58, %v4035_v34 }
 0x193   :  { %2573 = vpow2.f32 %v1875_v51  ;;  %v1691_v9 = vmul.f32 %v3594_v46, %v4036_v26  ;;  %v1747_v25 = vmul.f32 %v3591_v58, %v4037_v12  ;;  %v1748_v13 = vmul.f32 %v3594_v46, %v4038_v43 }
 0x194   :  { %v2556_v49 = vpop.eup %2555  ;;  %2575 = vpow2.f32 %v1930_v63  ;;  %v1641_v14 = vmul.f32 1.442695, %v1633_v2  ;;  %v1643_v1 = vmul.f32 1.442695, %v1634_v36  ;;  %v1698_v51 = vmul.f32 1.442695, %v1690_v11 }
 0x195   :  { %v2558_v41 = vpop.eup %2557  ;;  %v1659_v22 = vmul.f32 %v2556_v49, %v4023_v48  ;;  %2577 = vpow2.f32 %v1932_v15  ;;  %v1700_v63 = vmul.f32 1.442695, %v1691_v9  ;;  %v1755_v47 = vmul.f32 1.442695, %v1747_v25 }
 0x196   :  { %v2560_v3 = vpop.eup %2559  ;;  %v1660_v30 = vmul.f32 %v2558_v41, %v4024_v29  ;;  %2579 = vpow2.f32 %v1987_v20  ;;  %v1757_v48 = vmul.f32 1.442695, %v1748_v13 }
 0x197   :  { %v2562_v21 = vpop.eup %2561  ;;  %v1716_v19 = vmul.f32 %v2560_v3, %v4025_v56  ;;  %v1732_v7 = vadd.f32 %v2560_v3, %v2556_v49  ;;  %2581 = vpow2.f32 %v1989_v40 }
 0x198   :  { %v2564_v52 = vpop.eup %2563  ;;  %v1717_v0 = vmul.f32 %v2562_v21, %v4026_v55  ;;  %v1733_v57 = vadd.f32 %v2562_v21, %v2558_v41  ;;  %2583 = vpow2.f32 %v2044_v61 }
 0x199   :  { %v2566_v15 = vpop.eup %2565  ;;  %v1724_v2 = vadd.f32 %v1716_v19, %v1659_v22  ;;  %v1773_v36 = vmul.f32 %v2564_v52, %v4027_v54  ;;  %v1789_v29 = vadd.f32 %v2564_v52, %v1732_v7  ;;  %2585 = vpow2.f32 %v2046_v27 }
 0x19a   :  { %v2568_v20 = vpop.eup %2567  ;;  %v1725_v11 = vadd.f32 %v1717_v0, %v1660_v30  ;;  %v1774_v9 = vmul.f32 %v2566_v15, %v4028_v53  ;;  %v1790_v56 = vadd.f32 %v2566_v15, %v1733_v57  ;;  %2587 = vpow2.f32 %v1641_v14 }
 0x19b   :  { %v2570_v40 = vpop.eup %2569  ;;  %v1781_v49 = vadd.f32 %v1773_v36, %v1724_v2  ;;  %v1830_v25 = vmul.f32 %v2568_v20, %v4029_v5  ;;  %v1846_v55 = vadd.f32 %v2568_v20, %v1789_v29  ;;  %2589 = vpow2.f32 %v1643_v1 }
 0x19c   :  { %v2572_v61 = vpop.eup %2571  ;;  %v1782_v13 = vadd.f32 %v1774_v9, %v1725_v11  ;;  %v1831_v19 = vmul.f32 %v2570_v40, %v4030_v38  ;;  %v1847_v41 = vadd.f32 %v2570_v40, %v1790_v56  ;;  %2591 = vpow2.f32 %v1698_v51 }
 0x19d   :  { %v2574_v52 = vpop.eup %2573  ;;  %v1838_v7 = vadd.f32 %v1830_v25, %v1781_v49  ;;  %v1887_v0 = vmul.f32 %v2572_v61, %v4031_v33  ;;  %v1903_v54 = vadd.f32 %v2572_v61, %v1846_v55  ;;  %2593 = vpow2.f32 %v1700_v63  ;;  %v4039_v33 = vld [vmem:[#allocation47_spill] sm:$0xff] }
 0x19e   :  { %v2576_v57 = vpop.eup %2575  ;;  %v1839_v53 = vadd.f32 %v1831_v19, %v1782_v13  ;;  %v1888_v27 = vmul.f32 %v2574_v52, %v4032_v18  ;;  %v1904_v22 = vadd.f32 %v2574_v52, %v1847_v41  ;;  %2595 = vpow2.f32 %v1755_v47  ;;  %v4040_v18 = vld [vmem:[#allocation48_spill] sm:$0xff] }
 0x19f   :  { %v2578_v5 = vpop.eup %2577  ;;  %v1895_v14 = vadd.f32 %v1887_v0, %v1838_v7  ;;  %v1944_v1 = vmul.f32 %v2576_v57, %v3332_v44  ;;  %v1960_v3 = vadd.f32 %v2576_v57, %v1903_v54  ;;  %2597 = vpow2.f32 %v1757_v48 }
 0x1a0   :  { %v2580_v38 = vpop.eup %2579  ;;  %v1896_v30 = vadd.f32 %v1888_v27, %v1839_v53  ;;  %v1945_v51 = vmul.f32 %v2578_v5, %v3335_v24  ;;  %v1961_v21 = vadd.f32 %v2578_v5, %v1904_v22  ;;  %v1804_v63 = vmul.f32 %v3591_v58, %v4039_v33 }
 0x1a1   :  { %v2582_v15 = vpop.eup %2581  ;;  %v1952_v2 = vadd.f32 %v1944_v1, %v1895_v14  ;;  %v2017_v36 = vadd.f32 %v2580_v38, %v1960_v3  ;;  %v1805_v47 = vmul.f32 %v3594_v46, %v4040_v18  ;;  %v2001_v44 = vmul.f32 %v2580_v38, %v3453_v6 }
 0x1a2   :  { %v2584_v29 = vpop.eup %2583  ;;  %v1953_v20 = vadd.f32 %v1945_v51, %v1896_v30  ;;  %v2018_v11 = vadd.f32 %v2582_v15, %v1961_v21  ;;  %v1812_v48 = vmul.f32 1.442695, %v1804_v63  ;;  %v3629_v24 = vadd.f32 1.0, %v3596_v45 }
 0x1a3   :  { %v2586_v9 = vpop.eup %2585  ;;  %v2074_v56 = vadd.f32 %v2584_v29, %v2017_v36  ;;  %v1814_v40 = vmul.f32 1.442695, %v1805_v47  ;;  %v4041_v49 = vrot.slane %v3588_v32, 2  ;;  %v2002_v61 = vmul.f32 %v2582_v15, %v3456_v8 }
 0x1a4   :  { %v2588_v55 = vpop.eup %2587  ;;  %v2009_v13 = vadd.f32 %v2001_v44, %v1952_v2  ;;  %v2075_v19 = vadd.f32 %v2586_v9, %v2018_v11  ;;  %2599 = vpow2.f32 %v1812_v48  ;;  %v2058_v41 = vmul.f32 %v2584_v29, %v3466_v4 }
 0x1a5   :  { %v3634_v25 = vadd.f32 %v4041_v49, %v3588_v32  ;;  %v2590_v6 = vpop.eup %2589  ;;  %2601 = vrcp.f32 %v2074_v56  ;;  %v1657_v52 = vmul.f32 %v2588_v55, %v4033_v39  ;;  %v1861_v7 = vmul.f32 %v3591_v58, %v3354_v60 }
 0x1a6   :  { %v2592_v0 = vpop.eup %2591  ;;  %v2010_v54 = vadd.f32 %v2002_v61, %v1953_v20  ;;  %2603 = vrcp.f32 %v2075_v19  ;;  %v1658_v32 = vmul.f32 %v2590_v6, %v4034_v31  ;;  %v1862_v8 = vmul.f32 %v3594_v46, %v3357_v16 }
 0x1a7   :  { %v2594_v57 = vpop.eup %2593  ;;  %v1714_v53 = vmul.f32 %v2592_v0, %v4035_v34  ;;  %v1730_v27 = vadd.f32 %v2592_v0, %v2588_v55  ;;  %2605 = vpow2.f32 %v1814_v40  ;;  %v1869_v4 = vmul.f32 1.442695, %v1861_v7 }
 0x1a8   :  { %v2596_v22 = vpop.eup %2595  ;;  %v2059_v39 = vmul.f32 %v2586_v9, %v3469_v28  ;;  %v1715_v5 = vmul.f32 %v2594_v57, %v4036_v26  ;;  %v1871_v14 = vmul.f32 1.442695, %v1862_v8  ;;  %v1918_v1 = vmul.f32 %v3591_v58, %v3360_v17 }
 0x1a9   :  { %v2598_v3 = vpop.eup %2597  ;;  %v2066_v31 = vadd.f32 %v2058_v41, %v2009_v13  ;;  %v1722_v38 = vadd.f32 %v1714_v53, %v1657_v52  ;;  %v1731_v30 = vadd.f32 %v2594_v57, %v2590_v6  ;;  %2607 = vpow2.f32 %v1869_v4 }
 0x1aa   :  { %v1723_v51 = vadd.f32 %v1715_v5, %v1658_v32  ;;  %v1771_v34 = vmul.f32 %v2596_v22, %v4037_v12  ;;  %v1787_v21 = vadd.f32 %v2596_v22, %v1730_v27  ;;  %2609 = vpow2.f32 %v1871_v14 }
 0x1ab   :  { %v1772_v63 = vmul.f32 %v2598_v3, %v4038_v43  ;;  %v1919_v28 = vmul.f32 %v3594_v46, %v3363_v59  ;;  %v1926_v26 = vmul.f32 1.442695, %v1918_v1  ;;  %v1975_v15 = vmul.f32 %v3591_v58, %v3475_v23 }
 0x1ac   :  { %v1779_v2 = vadd.f32 %v1771_v34, %v1722_v38  ;;  %v1976_v36 = vmul.f32 %v3594_v46, %v3478_v62  ;;  %v2032_v47 = vmul.f32 %v3591_v58, %v3487_v10  ;;  %v2033_v12 = vmul.f32 %v3594_v46, %v3490_v42 }
 0x1ad   :  { %2611 = vpow2.f32 %v1926_v26  ;;  %v1928_v29 = vmul.f32 1.442695, %v1919_v28  ;;  %v1983_v43 = vmul.f32 1.442695, %v1975_v15  ;;  %v1588_v20 = vrot.slane %v3634_v25, 1 }
 0x1ae   :  { %v2600_v44 = vpop.eup %2599  ;;  %v1788_v11 = vadd.f32 %v2598_v3, %v1731_v30  ;;  %v1985_v48 = vmul.f32 1.442695, %v1976_v36  ;;  %v2040_v9 = vmul.f32 1.442695, %v2032_v47  ;;  %2613 = vrsqrt.f32 %v3596_v45 }
 0x1af   :  { %v2602_v56 = vpop.eup %2601  ;;  %v2067_v40 = vadd.f32 %v2059_v39, %v2010_v54  ;;  %v1828_v49 = vmul.f32 %v2600_v44, %v4039_v33  ;;  %2615 = vpow2.f32 %v1928_v29  ;;  %v2042_v58 = vmul.f32 1.442695, %v2033_v12 }
 0x1b0   :  { %v2604_v55 = vpop.eup %2603  ;;  %v3664_v61 = vmul.f32 %v2602_v56, %v2066_v31  ;;  %v1780_v46 = vadd.f32 %v1772_v63, %v1723_v51  ;;  %v1844_v13 = vadd.f32 %v2600_v44, %v1787_v21  ;;  %2617 = vpow2.f32 %v1983_v43 }
 0x1b1   :  { %v2606_v19 = vpop.eup %2605  ;;  %v3666_v6 = vmul.f32 %v2604_v55, %v2067_v40  ;;  %v1836_v41 = vadd.f32 %v1828_v49, %v1779_v2  ;;  %2619 = vpow2.f32 %v1985_v48  ;;  %v1589_v52 = vadd.f32 %v1588_v20, %v3634_v25 }
 0x1b2   :  { %v2098_v7 = vmul.f32 %v3664_v61, %v3664_v61  ;;  %v1829_v33 = vmul.f32 %v2606_v19, %v4040_v18  ;;  %v1845_v0 = vadd.f32 %v2606_v19, %v1788_v11  ;;  %2621 = vpow2.f32 %v2040_v9 }
 0x1b3   :  { %v2608_v54 = vpop.eup %2607  ;;  %v2099_v32 = vmul.f32 %v3666_v6, %v3666_v6  ;;  %2623 = vpow2.f32 %v2042_v58  ;;  %v1607_v4 = vadd.f32 1.0, %v1589_v52 }
 0x1b4   :  { %v2610_v8 = vpop.eup %2609  ;;  %v1837_v57 = vadd.f32 %v1829_v33, %v1780_v46  ;;  %v1885_v53 = vmul.f32 %v2608_v54, %v3354_v60  ;;  %v1901_v27 = vadd.f32 %v2608_v54, %v1844_v13  ;;  %2625 = vrcp.f32 %v3629_v24  ;;  %v4043_v33 = vld [vmem:[#allocation16_spill] sm:$0xff]  ;;  %v4044_v54 = vld [vmem:[#allocation18_spill] sm:$0xff] }
 0x1b5   :  { %v2111_v25 = vadd.f32 %v2099_v32, %v2098_v7  ;;  %2627 = vrsqrt.f32 %v1589_v52  ;;  %v1886_v22 = vmul.f32 %v2610_v8, %v3357_v16  ;;  %v1902_v39 = vadd.f32 %v2610_v8, %v1845_v0  ;;  %v4045_v32 = vld [vmem:[#allocation19_spill] sm:$0xff]  ;;  %v4046_v8 = vld [vmem:[#allocation49_spill] sm:$0xff] }
 0x1b6   :  { %v1893_v18 = vadd.f32 %v1885_v53, %v1836_v41  ;;  %2629 = vrcp.f32 %v1607_v4  ;;  %v4042_v41 = vld [vmem:[#allocation15_spill] sm:$0xff] }
 0x1b7   :  { %v2612_v5 = vpop.eup %2611  ;;  %v2112_v14 = vrot.slane %v2111_v25, 4  ;;  %v1894_v3 = vadd.f32 %v1886_v22, %v1837_v57  ;;  %v4048_v22 = vld [vmem:[#allocation51_spill] sm:$0xff] }
 0x1b8   :  { %v2614_v1 = vpop.eup %2613  ;;  %v1942_v31 = vmul.f32 %v2612_v5, %v3360_v17  ;;  %v1958_v38 = vadd.f32 %v2612_v5, %v1901_v27  ;;  %v4047_v27 = vld [vmem:[#allocation50_spill] sm:$0xff] }
 0x1b9   :  { %v2616_v30 = vpop.eup %2615  ;;  %v2113_v51 = vadd.f32 %v2112_v14, %v2111_v25  ;;  %v1604_v26 = vmul.f32 %v2614_v1, %v3596_v45  ;;  %v4049_v1 = vld [vmem:[#allocation26_spill] sm:$0xff] }
 0x1ba   :  { %v2618_v60 = vpop.eup %2617  ;;  %v1943_v24 = vmul.f32 %v2616_v30, %v3363_v59  ;;  %v1950_v34 = vadd.f32 %v1942_v31, %v1893_v18  ;;  %v1959_v21 = vadd.f32 %v2616_v30, %v1902_v39 }
 0x1bb   :  { %v2620_v63 = vpop.eup %2619  ;;  %v2114_v28 = vrot.slane %v2113_v51, 2  ;;  %v2015_v16 = vadd.f32 %v2618_v60, %v1958_v38  ;;  %v1999_v36 = vmul.f32 %v2618_v60, %v3475_v23  ;;  %v4050_v38 = vld [vmem:[#allocation27_spill] sm:$0xff] }
 0x1bc   :  { %v2622_v15 = vpop.eup %2621  ;;  %v1951_v2 = vadd.f32 %v1943_v24, %v1894_v3  ;;  %v2000_v17 = vmul.f32 %v2620_v63, %v3478_v62  ;;  %v2016_v47 = vadd.f32 %v2620_v63, %v1959_v21  ;;  %v4052_v21 = vld [vmem:[#allocation31_spill] sm:$0xff] }
 0x1bd   :  { %v2624_v12 = vpop.eup %2623  ;;  %v2115_v29 = vadd.f32 %v2114_v28, %v2113_v51  ;;  %v2072_v43 = vadd.f32 %v2622_v15, %v2015_v16  ;;  %v2007_v44 = vadd.f32 %v1999_v36, %v1950_v34  ;;  %v2056_v45 = vmul.f32 %v2622_v15, %v3487_v10  ;;  %v4051_v51 = vld [vmem:[#allocation30_spill] sm:$0xff]  ;;  %v4053_v28 = vld [vmem:[#allocation33_spill] sm:$0xff] }
 0x1be   :  { %v2626_v20 = vpop.eup %2625  ;;  %v2008_v59 = vadd.f32 %v2000_v17, %v1951_v2  ;;  %v2073_v11 = vadd.f32 %v2624_v12, %v2016_v47  ;;  %v2057_v40 = vmul.f32 %v2624_v12, %v3490_v42  ;;  %v4054_v12 = vld [vmem:[#allocation34_spill] sm:$0xff] }
 0x1bf   :  { %v2628_v48 = vpop.eup %2627  ;;  %v2116_v9 = vrot.slane %v2115_v29, 1  ;;  %2631 = vrcp.f32 %v2072_v43  ;;  %v1616_v56 = vmul.f32 %v2626_v20, %v1604_v26  ;;  %v2064_v58 = vadd.f32 %v2056_v45, %v2007_v44  ;;  %v4055_v44 = vld [vmem:[#allocation37_spill] sm:$0xff] }
 0x1c0   :  { %2633 = vrcp.f32 %v2073_v11  ;;  %v2065_v55 = vadd.f32 %v2057_v40, %v2008_v59  ;;  %v1603_v46 = vmul.f32 %v2628_v48, %v1589_v52  ;;  %v2630_v13 = vpop.eup %2629 }
 0x1c1   :  { %v2117_v23 = vadd.f32 %v2116_v9, %v2115_v29  ;;  %v1623_v62 = vmul.f32 %v1616_v56, %v3544_v50  ;;  %v1624_v49 = vmul.f32 %v1616_v56, %v3546_v35  ;;  %v4056_v56 = vld [vmem:[#allocation40_spill] sm:$0xff] }
 0x1c2   :  { %v1615_v39 = vmul.f32 %v2630_v13, %v1603_v46 }
 0x1c3   :  { %2635 = vrsqrt.f32 %v2117_v23  ;;  %v2141_v19 = vadd.f32 1.0, %v2117_v23  ;;  %v1639_v7 = vmul.f32 %v1623_v62, %v4042_v41  ;;  %v1640_v0 = vmul.f32 %v1624_v49, %v4043_v33 }
 0x1c4   :  { %v1696_v10 = vmul.f32 %v1623_v62, %v4044_v54  ;;  %v1697_v42 = vmul.f32 %v1624_v49, %v4045_v32  ;;  %v1753_v57 = vmul.f32 %v1623_v62, %v4046_v8  ;;  %v1754_v50 = vmul.f32 %v1624_v49, %v3270_v37 }
 0x1c5   :  { %2637 = vrcp.f32 %v2141_v19  ;;  %v1653_v35 = vmul.f32 1.442695, %v1639_v7  ;;  %v1655_v53 = vmul.f32 1.442695, %v1640_v0  ;;  %v1810_v52 = vmul.f32 %v1623_v62, %v4047_v27  ;;  %v4058_v0 = vld [vmem:[#allocation44_spill] sm:$0xff] }
 0x1c6   :  { %v1710_v25 = vmul.f32 1.442695, %v1696_v10  ;;  %v1712_v4 = vmul.f32 1.442695, %v1697_v42  ;;  %v1811_v18 = vmul.f32 %v1624_v49, %v4048_v22  ;;  %v1767_v5 = vmul.f32 1.442695, %v1753_v57 }
 0x1c7   :  { %2639 = vpow2.f32 %v1653_v35  ;;  %v1769_v14 = vmul.f32 1.442695, %v1754_v50  ;;  %v1867_v3 = vmul.f32 %v1623_v62, %v4049_v1  ;;  %v1824_v31 = vmul.f32 1.442695, %v1810_v52  ;;  %v4059_v57 = vld [vmem:[#allocation22_spill] sm:$0xff]  ;;  %v4060_v35 = vld [vmem:[#allocation23_spill] sm:$0xff] }
 0x1c8   :  { %2641 = vpow2.f32 %v1655_v53  ;;  %v1868_v30 = vmul.f32 %v1624_v49, %v4050_v38  ;;  %v1924_v60 = vmul.f32 %v1623_v62, %v4051_v51  ;;  %v1826_v34 = vmul.f32 1.442695, %v1811_v18  ;;  %v4061_v52 = vld [vmem:[#allocation24_spill] sm:$0xff] }
 0x1c9   :  { %v2632_v24 = vpop.eup %2631  ;;  %2643 = vpow2.f32 %v1710_v25  ;;  %v1925_v63 = vmul.f32 %v1624_v49, %v4052_v21  ;;  %v1981_v16 = vmul.f32 %v1623_v62, %v4053_v28  ;;  %v1881_v2 = vmul.f32 1.442695, %v1867_v3 }
 0x1ca   :  { %v2634_v26 = vpop.eup %2633  ;;  %v3699_v15 = vmul.f32 %v2632_v24, %v2064_v58  ;;  %2645 = vpow2.f32 %v1712_v4  ;;  %v1883_v36 = vmul.f32 1.442695, %v1868_v30  ;;  %v1938_v47 = vmul.f32 1.442695, %v1924_v60  ;;  %v4062_v30 = vld [vmem:[#allocation25_spill] sm:$0xff] }
 0x1cb   :  { %v3701_v17 = vmul.f32 %v2634_v26, %v2065_v55  ;;  %2647 = vpow2.f32 %v1767_v5  ;;  %v1982_v29 = vmul.f32 %v1624_v49, %v4054_v12  ;;  %v1940_v20 = vmul.f32 1.442695, %v1925_v63  ;;  %v4057_v55 = vld [vmem:[#allocation36_spill] sm:$0xff] }
 0x1cc   :  { %v2096_v43 = vmul.f32 %v3699_v15, %v3699_v15  ;;  %2649 = vpow2.f32 %v1769_v14  ;;  %v2038_v59 = vmul.f32 %v1623_v62, %v4055_v44  ;;  %v1995_v9 = vmul.f32 1.442695, %v1981_v16 }
 0x1cd   :  { %v2636_v11 = vpop.eup %2635  ;;  %v2097_v48 = vmul.f32 %v3701_v17, %v3701_v17  ;;  %2651 = vpow2.f32 %v1824_v31  ;;  %v2039_v45 = vmul.f32 %v1624_v49, %v4056_v56  ;;  %v1997_v58 = vmul.f32 1.442695, %v1982_v29 }
 0x1ce   :  { %v2137_v40 = vmul.f32 %v2636_v11, %v2117_v23  ;;  %2653 = vpow2.f32 %v1826_v34  ;;  %v3711_v46 = vmul.f32 %v1615_v39, %v4057_v55  ;;  %v2052_v7 = vmul.f32 1.442695, %v2038_v59 }
 0x1cf   :  { %v2638_v13 = vpop.eup %2637  ;;  %v2104_v19 = vadd.f32 %v2097_v48, %v2096_v43  ;;  %2655 = vpow2.f32 %v1881_v2  ;;  %v3714_v62 = vmul.f32 %v1615_v39, %v4058_v0  ;;  %v2054_v42 = vmul.f32 1.442695, %v2039_v45 }
 0x1d0   :  { %v2149_v10 = vmul.f32 %v2638_v13, %v2137_v40  ;;  %2657 = vpow2.f32 %v1883_v36  ;;  %v1637_v50 = vmul.f32 %v3711_v46, %v4059_v57  ;;  %v1694_v25 = vmul.f32 %v3711_v46, %v4061_v52 }
 0x1d1   :  { %v2640_v49 = vpop.eup %2639  ;;  %v2105_v23 = vrot.slane %v2104_v19, 4  ;;  %2659 = vpow2.f32 %v1938_v47  ;;  %v1638_v53 = vmul.f32 %v3714_v62, %v4060_v35  ;;  %v1695_v60 = vmul.f32 %v3714_v62, %v4062_v30 }
 0x1d2   :  { %v2642_v4 = vpop.eup %2641  ;;  %v2154_v18 = vmul.f32 %v2149_v10, %v3664_v61  ;;  %v2155_v39 = vmul.f32 %v2149_v10, %v3666_v6  ;;  %v1663_v5 = vmul.f32 %v2640_v49, %v4042_v41  ;;  %2661 = vpow2.f32 %v1940_v20 }
 0x1d3   :  { %v2644_v14 = vpop.eup %2643  ;;  %v2106_v3 = vadd.f32 %v2105_v23, %v2104_v19  ;;  %v1664_v31 = vmul.f32 %v2642_v4, %v4043_v33  ;;  %2663 = vpow2.f32 %v1995_v9  ;;  %v1649_v61 = vmul.f32 1.442695, %v1637_v50 }
 0x1d4   :  { %v2646_v24 = vpop.eup %2645  ;;  %2162 = vst [vmem:[#allocation3 + $0x10] sm:$0xff] %v2154_v18  ;;  %2163 = vst [vmem:[#allocation3 + $0x18] sm:$0xff] %v2155_v39  ;;  %v1720_v34 = vmul.f32 %v2644_v14, %v4044_v54  ;;  %v1736_v63 = vadd.f32 %v2644_v14, %v2640_v49  ;;  %2665 = vpow2.f32 %v1997_v58  ;;  %v1706_v39 = vmul.f32 1.442695, %v1694_v25 }
 0x1d5   :  { %v2648_v6 = vpop.eup %2647  ;;  %v2107_v16 = vrot.slane %v2106_v3, 2  ;;  %v1721_v41 = vmul.f32 %v2646_v24, %v4045_v32  ;;  %v1737_v26 = vadd.f32 %v2646_v24, %v2642_v4  ;;  %2667 = vpow2.f32 %v2052_v7 }
 0x1d6   :  { %v2650_v2 = vpop.eup %2649  ;;  %v1728_v33 = vadd.f32 %v1720_v34, %v1663_v5  ;;  %v1777_v36 = vmul.f32 %v2648_v6, %v4046_v8  ;;  %v1793_v47 = vadd.f32 %v2648_v6, %v1736_v63  ;;  %2669 = vpow2.f32 %v2054_v42 }
 0x1d7   :  { %v2652_v29 = vpop.eup %2651  ;;  %v2108_v43 = vadd.f32 %v2107_v16, %v2106_v3  ;;  %v1729_v20 = vadd.f32 %v1721_v41, %v1664_v31  ;;  %v1778_v54 = vmul.f32 %v2650_v2, %v3270_v37  ;;  %v1794_v59 = vadd.f32 %v2650_v2, %v1737_v26  ;;  %v4063_v26 = vld [vmem:[#allocation52_spill] sm:$0xff] }
 0x1d8   :  { %v2654_v11 = vpop.eup %2653  ;;  %v1785_v48 = vadd.f32 %v1777_v36, %v1728_v33  ;;  %v1834_v9 = vmul.f32 %v2652_v29, %v4047_v27  ;;  %v1850_v45 = vadd.f32 %v2652_v29, %v1793_v47  ;;  %v1651_v32 = vmul.f32 1.442695, %v1638_v53  ;;  %v4064_v36 = vld [vmem:[#allocation53_spill] sm:$0xff] }
 0x1d9   :  { %v2656_v40 = vpop.eup %2655  ;;  %v2109_v58 = vrot.slane %v2108_v43, 1  ;;  %v1786_v55 = vadd.f32 %v1778_v54, %v1729_v20  ;;  %v1835_v13 = vmul.f32 %v2654_v11, %v4048_v22  ;;  %v1851_v8 = vadd.f32 %v2654_v11, %v1794_v59  ;;  %v4065_v54 = vld [vmem:[#allocation54_spill] sm:$0xff]  ;;  %v4066_v59 = vld [vmem:[#allocation55_spill] sm:$0xff] }
 0x1da   :  { %v2658_v19 = vpop.eup %2657  ;;  %v1842_v7 = vadd.f32 %v1834_v9, %v1785_v48  ;;  %v1891_v0 = vmul.f32 %v2656_v40, %v4049_v1  ;;  %v1907_v10 = vadd.f32 %v2656_v40, %v1850_v45  ;;  %2671 = vpow2.f32 %v1649_v61  ;;  %v4067_v9 = vld [vmem:[#allocation28_spill] sm:$0xff] }
 0x1db   :  { %v2660_v37 = vpop.eup %2659  ;;  %v2110_v42 = vadd.f32 %v2109_v58, %v2108_v43  ;;  %v1843_v50 = vadd.f32 %v1835_v13, %v1786_v55  ;;  %v1892_v49 = vmul.f32 %v2658_v19, %v4050_v38  ;;  %v1908_v27 = vadd.f32 %v2658_v19, %v1851_v8  ;;  %v4069_v55 = vld [vmem:[#allocation32_spill] sm:$0xff] }
 0x1dc   :  { %v2662_v23 = vpop.eup %2661  ;;  %v1899_v53 = vadd.f32 %v1891_v0, %v1842_v7  ;;  %v1948_v4 = vmul.f32 %v2660_v37, %v4051_v51  ;;  %v1964_v18 = vadd.f32 %v2660_v37, %v1907_v10  ;;  %v1708_v61 = vmul.f32 1.442695, %v1695_v60  ;;  %v4070_v0 = vld [vmem:[#allocation14_spill] sm:$0xff] }
 0x1dd   :  { %v2664_v22 = vpop.eup %2663  ;;  %2673 = vrsqrt.f32 %v2110_v42  ;;  %v2140_v5 = vadd.f32 1.0, %v2110_v42  ;;  %v1900_v14 = vadd.f32 %v1892_v49, %v1843_v50  ;;  %v1949_v1 = vmul.f32 %v2662_v23, %v4052_v21 }
 0x1de   :  { %v2666_v3 = vpop.eup %2665  ;;  %v1956_v31 = vadd.f32 %v1948_v4, %v1899_v53  ;;  %v1965_v24 = vadd.f32 %v2662_v23, %v1908_v27  ;;  %v2021_v34 = vadd.f32 %v2664_v22, %v1964_v18  ;;  %2675 = vpow2.f32 %v1651_v32  ;;  %v4068_v32 = vld [vmem:[#allocation29_spill] sm:$0xff]  ;;  %v4072_v23 = vld [vmem:[#allocation35_spill] sm:$0xff] }
 0x1df   :  { %v2668_v63 = vpop.eup %2667  ;;  %2677 = vrcp.f32 %v2140_v5  ;;  %v1957_v38 = vadd.f32 %v1949_v1, %v1900_v14  ;;  %v2005_v51 = vmul.f32 %v2664_v22, %v4053_v28  ;;  %v2006_v41 = vmul.f32 %v2666_v3, %v4054_v12  ;;  %v4073_v22 = vld [vmem:[#allocation21_spill] sm:$0xff] }
 0x1e0   :  { %v2670_v6 = vpop.eup %2669  ;;  %v2022_v16 = vadd.f32 %v2666_v3, %v1965_v24  ;;  %v2078_v25 = vadd.f32 %v2668_v63, %v2021_v34  ;;  %2679 = vpow2.f32 %v1706_v39  ;;  %v1751_v21 = vmul.f32 %v3711_v46, %v4063_v26  ;;  %v4074_v3 = vld [vmem:[#allocation56_spill] sm:$0xff] }
 0x1e1   :  { %v2013_v2 = vadd.f32 %v2005_v51, %v1956_v31  ;;  %v1752_v47 = vmul.f32 %v3714_v62, %v4064_v36  ;;  %v2014_v29 = vadd.f32 %v2006_v41, %v1957_v38  ;;  %v2062_v60 = vmul.f32 %v2668_v63, %v4055_v44 }
 0x1e2   :  { %v2079_v33 = vadd.f32 %v2670_v6, %v2022_v16  ;;  %2681 = vrcp.f32 %v2078_v25  ;;  %v1763_v43 = vmul.f32 1.442695, %v1751_v21  ;;  %v1808_v12 = vmul.f32 %v3711_v46, %v4065_v54 }
 0x1e3   :  { %2683 = vpow2.f32 %v1708_v61  ;;  %v1765_v20 = vmul.f32 1.442695, %v1752_v47  ;;  %v1809_v11 = vmul.f32 %v3714_v62, %v4066_v59  ;;  %v2063_v48 = vmul.f32 %v2670_v6, %v4056_v56  ;;  %v4071_v56 = vld [vmem:[#allocation41_spill] sm:$0xff] }
 0x1e4   :  { %v2672_v28 = vpop.eup %2671  ;;  %2685 = vrcp.f32 %v2079_v33  ;;  %v1865_v45 = vmul.f32 %v3711_v46, %v4067_v9  ;;  %v1866_v44 = vmul.f32 %v3714_v62, %v4068_v32  ;;  %v1820_v40 = vmul.f32 1.442695, %v1808_v12 }
 0x1e5   :  { %2687 = vpow2.f32 %v1763_v43  ;;  %v1822_v58 = vmul.f32 1.442695, %v1809_v11  ;;  %v1922_v13 = vmul.f32 %v3711_v46, %v4069_v55  ;;  %v1923_v10 = vmul.f32 %v3714_v62, %v4070_v0 }
 0x1e6   :  { %2689 = vpow2.f32 %v1765_v20  ;;  %v1877_v19 = vmul.f32 1.442695, %v1865_v45  ;;  %v1879_v7 = vmul.f32 1.442695, %v1866_v44  ;;  %v1979_v37 = vmul.f32 %v3711_v46, %v4071_v56 }
 0x1e7   :  { %v2674_v8 = vpop.eup %2673  ;;  %v2070_v27 = vadd.f32 %v2062_v60, %v2013_v2  ;;  %2691 = vpow2.f32 %v1820_v40  ;;  %v1980_v53 = vmul.f32 %v3714_v62, %v4072_v23  ;;  %v1661_v18 = vmul.f32 %v2672_v28, %v4059_v57 }
 0x1e8   :  { %v2676_v50 = vpop.eup %2675  ;;  %v2136_v49 = vmul.f32 %v2674_v8, %v2110_v42  ;;  %2693 = vpow2.f32 %v1822_v58  ;;  %v1934_v39 = vmul.f32 1.442695, %v1922_v13  ;;  %v2036_v5 = vmul.f32 %v3711_v46, %v4073_v22 }
 0x1e9   :  { %v2678_v4 = vpop.eup %2677  ;;  %2695 = vpow2.f32 %v1877_v19  ;;  %v1936_v1 = vmul.f32 1.442695, %v1923_v10  ;;  %v2037_v31 = vmul.f32 %v3714_v62, %v4074_v3  ;;  %v1662_v24 = vmul.f32 %v2676_v50, %v4060_v35 }
 0x1ea   :  { %v2148_v14 = vmul.f32 %v2678_v4, %v2136_v49  ;;  %v2680_v42 = vpop.eup %2679  ;;  %2697 = vpow2.f32 %v1879_v7  ;;  %v1991_v34 = vmul.f32 1.442695, %v1979_v37  ;;  %v1993_v63 = vmul.f32 1.442695, %v1980_v53 }
 0x1eb   :  { %v1718_v6 = vmul.f32 %v2680_v42, %v4061_v52  ;;  %v1734_v46 = vadd.f32 %v2680_v42, %v2672_v28  ;;  %v2071_v16 = vadd.f32 %v2063_v48, %v2014_v29  ;;  %2699 = vpow2.f32 %v1934_v39 }
 0x1ec   :  { %v2682_v38 = vpop.eup %2681  ;;  %v2152_v57 = vmul.f32 %v2148_v14, %v3699_v15  ;;  %v2153_v61 = vmul.f32 %v2148_v14, %v3701_v17  ;;  %v2048_v62 = vmul.f32 1.442695, %v2036_v5  ;;  %2701 = vpow2.f32 %v1936_v1 }
 0x1ed   :  { %v2684_v51 = vpop.eup %2683  ;;  %v3771_v25 = vmul.f32 %v2682_v38, %v2070_v27  ;;  %v2050_v2 = vmul.f32 1.442695, %v2037_v31  ;;  %v1726_v52 = vadd.f32 %v1718_v6, %v1661_v18  ;;  %2703 = vpow2.f32 %v1991_v34 }
 0x1ee   :  { %v2686_v41 = vpop.eup %2685  ;;  %2160 = vst [vmem:[#allocation3] sm:$0xff] %v2152_v57  ;;  %2161 = vst [vmem:[#allocation3 + $0x8] sm:$0xff] %v2153_v61  ;;  %v1719_v35 = vmul.f32 %v2684_v51, %v4062_v30  ;;  %v1735_v21 = vadd.f32 %v2684_v51, %v2676_v50  ;;  %2705 = vpow2.f32 %v1993_v63 }
 0x1ef   :  { %v2688_v15 = vpop.eup %2687  ;;  %v3774_v33 = vmul.f32 %v2686_v41, %v2071_v16  ;;  %v2102_v17 = vmul.f32 %v3771_v25, %v3771_v25  ;;  %2707 = vpow2.f32 %v2048_v62 }
 0x1f0   :  { %v2690_v47 = vpop.eup %2689  ;;  %v1727_v29 = vadd.f32 %v1719_v35, %v1662_v24  ;;  %v1791_v60 = vadd.f32 %v2688_v15, %v1734_v46  ;;  %v1775_v30 = vmul.f32 %v2688_v15, %v4063_v26  ;;  %2709 = vpow2.f32 %v2050_v2 }
 0x1f1   :  { %v2103_v43 = vmul.f32 %v3774_v33, %v3774_v33  ;;  %v1792_v28 = vadd.f32 %v2690_v47, %v1735_v21  ;;  %v2692_v20 = vpop.eup %2691  ;;  %v1776_v12 = vmul.f32 %v2690_v47, %v4064_v36 }
 0x1f2   :  { %v2694_v11 = vpop.eup %2693  ;;  %v1783_v45 = vadd.f32 %v1775_v30, %v1726_v52  ;;  %v1848_v44 = vadd.f32 %v2692_v20, %v1791_v60  ;;  %v1832_v7 = vmul.f32 %v2692_v20, %v4065_v54 }
 0x1f3   :  { %v2125_v48 = vadd.f32 %v2103_v43, %v2102_v17  ;;  %v2696_v40 = vpop.eup %2695  ;;  %v1784_v58 = vadd.f32 %v1776_v12, %v1727_v29  ;;  %v1849_v13 = vadd.f32 %v2694_v11, %v1792_v28  ;;  %v1833_v26 = vmul.f32 %v2694_v11, %v4066_v59 }
 0x1f4   :  { %v2698_v8 = vpop.eup %2697  ;;  %v1905_v10 = vadd.f32 %v2696_v40, %v1848_v44  ;;  %v1840_v27 = vadd.f32 %v1832_v7, %v1783_v45  ;;  %v1889_v5 = vmul.f32 %v2696_v40, %v4067_v9 }
 0x1f5   :  { %v2126_v19 = vrot.slane %v2125_v48, 4  ;;  %v1906_v37 = vadd.f32 %v2698_v8, %v1849_v13  ;;  %v2700_v50 = vpop.eup %2699  ;;  %v1841_v53 = vadd.f32 %v1833_v26, %v1784_v58  ;;  %v1890_v31 = vmul.f32 %v2698_v8, %v4068_v32 }
 0x1f6   :  { %v2702_v36 = vpop.eup %2701  ;;  %v1962_v4 = vadd.f32 %v2700_v50, %v1905_v10  ;;  %v1897_v34 = vadd.f32 %v1889_v5, %v1840_v27  ;;  %v1946_v6 = vmul.f32 %v2700_v50, %v4069_v55 }
 0x1f7   :  { %v2127_v49 = vadd.f32 %v2126_v19, %v2125_v48  ;;  %v2704_v18 = vpop.eup %2703  ;;  %v1963_v14 = vadd.f32 %v2702_v36, %v1906_v37  ;;  %v1898_v38 = vadd.f32 %v1890_v31, %v1841_v53  ;;  %v1947_v51 = vmul.f32 %v2702_v36, %v4070_v0 }
 0x1f8   :  { %v2706_v1 = vpop.eup %2705  ;;  %v2019_v42 = vadd.f32 %v2704_v18, %v1962_v4  ;;  %v1954_v16 = vadd.f32 %v1946_v6, %v1897_v34  ;;  %v2003_v41 = vmul.f32 %v2704_v18, %v4071_v56 }
 0x1f9   :  { %v2128_v39 = vrot.slane %v2127_v49, 2  ;;  %v2708_v54 = vpop.eup %2707  ;;  %v2020_v59 = vadd.f32 %v2706_v1, %v1963_v14  ;;  %v1955_v62 = vadd.f32 %v1947_v51, %v1898_v38  ;;  %v2004_v35 = vmul.f32 %v2706_v1, %v4072_v23 }
 0x1fa   :  { %v2710_v63 = vpop.eup %2709  ;;  %v2076_v57 = vadd.f32 %v2708_v54, %v2019_v42  ;;  %v2011_v21 = vadd.f32 %v2003_v41, %v1954_v16  ;;  %v2060_v15 = vmul.f32 %v2708_v54, %v4073_v22 }
 0x1fb   :  { %v2129_v24 = vadd.f32 %v2128_v39, %v2127_v49  ;;  %v2077_v46 = vadd.f32 %v2710_v63, %v2020_v59  ;;  %v2012_v2 = vadd.f32 %v2004_v35, %v1955_v62  ;;  %v2061_v55 = vmul.f32 %v2710_v63, %v4074_v3 }
 0x1fc   :  { %2711 = vrcp.f32 %v2076_v57  ;;  %v2068_v17 = vadd.f32 %v2060_v15, %v2011_v21 }
 0x1fd   :  { %v2130_v61 = vrot.slane %v2129_v24, 1  ;;  %2713 = vrcp.f32 %v2077_v46  ;;  %v2069_v52 = vadd.f32 %v2061_v55, %v2012_v2 }
 0x1ff   :  { %v2131_v9 = vadd.f32 %v2130_v61, %v2129_v24 }
 0x201   :  { %2715 = vrsqrt.f32 %v2131_v9  ;;  %v2143_v32 = vadd.f32 1.0, %v2131_v9 }
 0x203   :  { %2717 = vrcp.f32 %v2143_v32 }
 0x206   :  { %v2712_v0 = vpop.eup %2711 }
 0x207   :  { %v2714_v47 = vpop.eup %2713  ;;  %v2092_v29 = vmul.f32 %v2712_v0, %v2068_v17 }
 0x208   :  { %v2093_v60 = vmul.f32 %v2714_v47, %v2069_v52 }
 0x209   :  { %v2100_v30 = vmul.f32 %v2092_v29, %v2092_v29 }
 0x20a   :  { %v2101_v20 = vmul.f32 %v2093_v60, %v2093_v60 }
 0x20b   :  { %v2716_v43 = vpop.eup %2715 }
 0x20c   :  { %v2139_v28 = vmul.f32 %v2716_v43, %v2131_v9  ;;  %v2118_v23 = vadd.f32 %v2101_v20, %v2100_v30 }
 0x20d   :  { %v2718_v56 = vpop.eup %2717 }
 0x20e   :  { %v2151_v12 = vmul.f32 %v2718_v56, %v2139_v28  ;;  %v2119_v22 = vrot.slane %v2118_v23, 4 }
 0x210   :  { %v2158_v11 = vmul.f32 %v2151_v12, %v3771_v25  ;;  %v2159_v48 = vmul.f32 %v2151_v12, %v3774_v33  ;;  %v2120_v3 = vadd.f32 %v2119_v22, %v2118_v23 }
 0x212   :  { %2166 = vst [vmem:[#allocation3 + $0x30] sm:$0xff] %v2158_v11  ;;  %2167 = vst [vmem:[#allocation3 + $0x38] sm:$0xff] %v2159_v48  ;;  %v2121_v45 = vrot.slane %v2120_v3, 2 }
 0x214   :  { %v2122_v44 = vadd.f32 %v2121_v45, %v2120_v3 }
 0x216   :  { %v2123_v40 = vrot.slane %v2122_v44, 1 }
 0x218   :  { %v2124_v58 = vadd.f32 %v2123_v40, %v2122_v44 }
 0x21a   :  { %2719 = vrsqrt.f32 %v2124_v58  ;;  %v2142_v13 = vadd.f32 1.0, %v2124_v58 }
 0x21c   :  { %2721 = vrcp.f32 %v2142_v13 }
 0x224   :  { %v2720_v8 = vpop.eup %2719 }
 0x225   :  { %v2138_v19 = vmul.f32 %v2720_v8, %v2124_v58 }
 0x226   :  { %v2722_v7 = vpop.eup %2721 }
 0x227   :  { %v2150_v10 = vmul.f32 %v2722_v7, %v2138_v19 }
 0x229   :  { %v2156_v25 = vmul.f32 %v2150_v10, %v2092_v29  ;;  %v2157_v26 = vmul.f32 %v2150_v10, %v2093_v60 }
 0x22b   :  { %2164 = vst [vmem:[#allocation3 + $0x20] sm:$0xff] %v2156_v25  ;;  %2165 = vst [vmem:[#allocation3 + $0x28] sm:$0xff] %v2157_v26 }
 0x22c   :  { %2734 = shalt.err (!%p2731_p4)
}
 0x22d   :  { %s2735_s1 = scalar_lea.hbm %s3808_s2, 1024 }
 0x22e   :  { %p2736_p5 = scmp.ne.s32.totalorder %s3808_s2, %s2735_s1  ;;  %p2739_p6 = scmp.lt.u32.totalorder %s2735_s1, %s3808_s2 }
 0x230   :  { %p2741_p7 = pnand %p2739_p6, %p2736_p5 }
 0x232   :  { %2744 = shalt.err (!%p2741_p7)
}
 0x233   :  { %s2748_s12 = smov 128   ;;  %s2749_s13 = smov 8  }
 0x234   :  { %2179 = dma.vmem_to_hbm [thread:$0]  %s2174_s4, 1024, %s3808_s2, [#allocation4], %s2748_s12, %s2748_s12, %s2749_s13  }
 0x235   :  { %2745 = dma.done.wait [#allocation4], 1024  }
 0x236   :  { %2746 = vsyncadd [#allocation4], 4294966272 }
 0x237   :  { %2183 = vsyncpa [#allocation4], 1 }

</bundles_post_ra>
